<compile_context>
chip_gen: v6e
topology: v6e:2x2x1
jax: 0.10.0
libtpu: 0.0.40
codegen_flags: <defaults>
</compile_context>

<pallas_src>
import functools
from typing import NamedTuple

import jax
import jax.numpy as jnp
from jax.experimental import pallas as pl
from jax.experimental.pallas import tpu as pltpu

BN_EPS = 1e-5
LRELU_SLOPE = 0.2  # TODO(synk): djtransgan get_activate('lrelu') slope assumed 0.2 (torch nn.LeakyReLU default is 0.01)


def _ceil_to(x, m):
    return (x + m - 1) // m * m


def _cdiv(a, b):
    return -(-a // b)


def _tensorcores_per_chip():
    """2 TensorCores per chip on v7x; 1 on v5e/v6e.  Defaults to 1 if unknown."""
    try:
        dev = jax.devices()[0]
        if dev.platform != "tpu":
            return 1
        kind = str(getattr(dev, "device_kind", "")).lower()
        if "v7" in kind or "7x" in kind:
            return 2
    except Exception:
        pass
    return 1


class Plan(NamedTuple):
    F: int
    F_pad: int
    TK: int
    n_k: int
    H1: int
    H1_pad: int
    TH1: int
    n_j: int
    H2: int
    H2_pad: int


def _make_plan(F, H1, H2):
    H1_pad = _ceil_to(H1, 128)
    H2_pad = _ceil_to(H2, 128)
    # Split the layer-1 output columns across TensorCores only when there are 2.
    if _tensorcores_per_chip() >= 2 and H1_pad % 256 == 0:
        n_j, TH1 = 2, H1_pad // 2
    else:
        n_j, TH1 = 1, H1_pad
    # W1 block (TK x TH1 bf16) capped at ~4 MiB (8 MiB double-buffered fits the
    # 32 MiB scoped VMEM on all generations incl. v7x); grid collapses for small F.
    tk_max = max(256, ((4 << 20) // (TH1 * 2)) // 128 * 128)
    n_k = max(1, _cdiv(F, tk_max))
    TK = _ceil_to(_cdiv(F, n_k), 128)
    F_pad = TK * n_k
    return Plan(F, F_pad, TK, n_k, H1, H1_pad, TH1, n_j, H2, H2_pad)


def prepare_mlps_params(w1, b1, gamma, beta, w2, b2):
    """One-time weight prep (bf16 cast + zero padding), hoisted out of forward.

    Linear weights are stored [in, out].  Returns (plan, params)."""
    F, H1 = w1.shape
    H2 = w2.shape[1]
    plan = _make_plan(F, H1, H2)
    w1_p = jnp.pad(w1.astype(jnp.bfloat16),
                   ((0, plan.F_pad - F), (0, plan.H1_pad - H1)))
    w2_p = jnp.pad(w2.astype(jnp.bfloat16),
                   ((0, plan.H1_pad - H1), (0, plan.H2_pad - H2)))
    b1_p = jnp.pad(b1.astype(jnp.float32), (0, plan.H1_pad - H1)).reshape(1, plan.H1_pad)
    g_p = jnp.pad(gamma.astype(jnp.float32), (0, plan.H1_pad - H1)).reshape(1, plan.H1_pad)
    bt_p = jnp.pad(beta.astype(jnp.float32), (0, plan.H1_pad - H1)).reshape(1, plan.H1_pad)
    b2_p = b2.astype(jnp.float32).reshape(1, H2)
    return plan, (w1_p, b1_p, g_p, bt_p, w2_p, b2_p)


def _mlps_kernel(x_ref, w1_ref, b1_ref, g_ref, beta_ref, w2_ref, o_ref, acc_ref,
                 *, batch, block_k, num_k):
    # All program_id reads stay at the kernel top level (never inside pl.when).
    k = pl.program_id(1)

    @pl.when(k == 0)
    def _init():
        acc_ref[...] = jnp.zeros_like(acc_ref)

    if num_k == 1:
        x_blk = x_ref[...]                              # x fully resident, one DMA
    else:
        x_blk = x_ref[:, pl.ds(k * block_k, block_k)]   # in-kernel K slice

    # Layer-1 partial matmul: bf16 operands, f32 accumulation on the MXU.
    acc_ref[...] += jnp.dot(x_blk, w1_ref[...], preferred_element_type=jnp.float32)

    @pl.when(k == num_k - 1)
    def _finalize():
        h = acc_ref[...] + b1_ref[...]                  # (B_pad, TH1) f32

        # BatchNorm1d, training-mode batch statistics over the *real* rows only
        # (padded batch rows masked out), two-pass masked variance, folded
        # scale/shift.  Epilogue kept in f32 (v5e has no bf16 VPU/EUP).
        rows = jax.lax.broadcasted_iota(jnp.int32, h.shape, 0)
        mask = (rows < batch).astype(jnp.float32)
        inv_b = jnp.float32(1.0 / batch)
        mean = jnp.sum(h * mask, axis=0, keepdims=True) * inv_b
        diff = (h - mean) * mask
        var = jnp.sum(diff * diff, axis=0, keepdims=True) * inv_b
        scale = g_ref[...] * jax.lax.rsqrt(var + BN_EPS)
        shift = beta_ref[...] - mean * scale
        h = h * scale + shift

        # LeakyReLU
        h = jnp.maximum(h, LRELU_SLOPE * h)

        # Layer-2 matmul for this H1 block (b2 is added in the wrapper).
        y = jnp.dot(h.astype(jnp.bfloat16), w2_ref[...],
                    preferred_element_type=jnp.float32).astype(o_ref.dtype)
        if o_ref.ndim == 3:      # 2-TC path: one partial per H1 block
            o_ref[...] = y[None]
        else:                    # single-TC path: final output written directly
            o_ref[...] = y


@functools.partial(jax.jit, static_argnums=(1,))
def mlps_forward(x, plan, params):
    """x: [B, C, H, W] or [B, F]; returns [B, H2] float32."""
    w1_p, b1_p, g_p, bt_p, w2_p, b2_p = params
    if x.ndim > 2:
        x = x.reshape(x.shape[0], -1)          # torch.flatten(x, start_dim=1)
    B, F = x.shape
    assert F == plan.F, "input feature dim does not match prepared params"

    B_pad = _ceil_to(max(B, 16), 16)           # bf16 packs 16 rows per vreg sublane group
    x_p = jnp.pad(x, ((0, B_pad - B), (0, plan.F_pad - F))).astype(jnp.bfloat16)

    if plan.n_j == 1:
        out_shape = jax.ShapeDtypeStruct((B_pad, plan.H2_pad), jnp.float32)
        out_spec = pl.BlockSpec((B_pad, plan.H2_pad), lambda j, k: (0, 0))
    else:
        out_shape = jax.ShapeDtypeStruct((plan.n_j, B_pad, plan.H2_pad), jnp.float32)
        out_spec = pl.BlockSpec((1, B_pad, plan.H2_pad), lambda j, k: (j, 0, 0))

    grid_spec = pltpu.PrefetchScalarGridSpec(
        num_scalar_prefetch=0,
        grid=(plan.n_j, plan.n_k),                                 # (H1 blocks, K reduction innermost)
        in_specs=[
            pl.BlockSpec((B_pad, plan.F_pad), lambda j, k: (0, 0)),      # x (fully resident)
            pl.BlockSpec((plan.TK, plan.TH1), lambda j, k: (k, j)),      # W1
            pl.BlockSpec((1, plan.TH1), lambda j, k: (0, j)),            # b1
            pl.BlockSpec((1, plan.TH1), lambda j, k: (0, j)),            # gamma
            pl.BlockSpec((1, plan.TH1), lambda j, k: (0, j)),            # beta
            pl.BlockSpec((plan.TH1, plan.H2_pad), lambda j, k: (j, 0)),  # W2
        ],
        out_specs=out_spec,
        scratch_shapes=[pltpu.VMEM((B_pad, plan.TH1), jnp.float32)],
    )

    out = pl.pallas_call(
        functools.partial(_mlps_kernel, batch=B, block_k=plan.TK, num_k=plan.n_k),
        out_shape=out_shape,
        grid_spec=grid_spec,
        compiler_params=pltpu.CompilerParams(
            dimension_semantics=("parallel", "arbitrary"),
            vmem_limit_bytes=32 << 20,
        ),
    )(x_p, w1_p, b1_p, g_p, bt_p, w2_p)

    if plan.n_j > 1:
        out = out.sum(axis=0)   # tiny (2, B_pad, H2) partial-sum across TensorCores
    return out[:B, :plan.H2] + b2_p


def mlps_reference(x, w1, b1, gamma, beta, w2, b2):
    """Pure-JAX reference with the kernel's mixed-precision policy
    (bf16 matmul operands, f32 accumulation / BatchNorm statistics)."""
    if x.ndim > 2:
        x = x.reshape(x.shape[0], -1)
    h = jnp.dot(x.astype(jnp.bfloat16), w1.astype(jnp.bfloat16),
                preferred_element_type=jnp.float32) + b1
    mean = h.mean(0, keepdims=True)
    var = ((h - mean) ** 2).mean(0, keepdims=True)
    h = (h - mean) * jax.lax.rsqrt(var + BN_EPS) * gamma + beta
    h = jnp.maximum(h, LRELU_SLOPE * h)
    return jnp.dot(h.astype(jnp.bfloat16), w2.astype(jnp.bfloat16),
                   preferred_element_type=jnp.float32) + b2


if __name__ == "__main__":
    key = jax.random.PRNGKey(0)
    k_x, k_w1, k_w2, k_g = jax.random.split(key, 4)

    # Small shapes consistent with the module's forward (x is NCHW, flattened inside).
    B, C, H, W = 2, 4, 16, 16
    in_dim = C * H * W            # 1024
    out_dims = [512, 256]         # module defaults

    x = jax.random.normal(k_x, (B, C, H, W), dtype=jnp.float32)

    # init_weights-style synthetic params (N(0, 0.02) linears, N(1, 0.02) BN gamma,
    # zero biases).  Linear weights stored [in, out] (transpose of torch [out, in]).
    w1 = 0.02 * jax.random.normal(k_w1, (in_dim, out_dims[0]), dtype=jnp.float32)
    b1 = jnp.zeros((out_dims[0],), dtype=jnp.float32)
    gamma = 1.0 + 0.02 * jax.random.normal(k_g, (out_dims[0],), dtype=jnp.float32)
    beta = jnp.zeros((out_dims[0],), dtype=jnp.float32)
    w2 = 0.02 * jax.random.normal(k_w2, (out_dims[0], out_dims[1]), dtype=jnp.float32)
    b2 = jnp.zeros((out_dims[1],), dtype=jnp.float32)

    # One-time weight prep (bf16 cast + padding) hoisted out of the forward pass.
    plan, params = prepare_mlps_params(w1, b1, gamma, beta, w2, b2)

    out = mlps_forward(x, plan, params)
    out = jax.block_until_ready(out)

    ref = mlps_reference(x, w1, b1, gamma, beta, w2, b2)
    assert out.shape == (B, out_dims[1])
    assert jnp.allclose(out, ref, atol=1e-2, rtol=1e-2), "mismatch vs reference"

    print("KERNEL_OK")
</pallas_src>

<mosaic_0001>
module attributes {stable_mosaic.version = 11 : i64} {
  func.func @_mlps_kernel(%arg0: i32, %arg1: i32, %arg2: memref<16x1024xbf16, #tpu.memory_space<vmem>>, %arg3: memref<1024x512xbf16, #tpu.memory_space<vmem>>, %arg4: memref<1x512xf32, #tpu.memory_space<vmem>>, %arg5: memref<1x512xf32, #tpu.memory_space<vmem>>, %arg6: memref<1x512xf32, #tpu.memory_space<vmem>>, %arg7: memref<512x256xbf16, #tpu.memory_space<vmem>>, %arg8: memref<16x256xf32, #tpu.memory_space<vmem>>, %arg9: memref<16x512xf32, #tpu.memory_space<vmem>>) attributes {dimension_semantics = [#tpu.dimension_semantics<parallel>, #tpu.dimension_semantics<arbitrary>], iteration_bounds = array<i64: 1, 1>, scalar_prefetch = 0 : i64, scratch_operands = 1 : i64, tpu.core_type = #tpu.core_type<tc>, window_params = [{pipeline_mode = #tpu.pipeline_mode<synchronous>, transform_indices = @transform_0, window_bounds = array<i64: 16, 1024>}, {transform_indices = @transform_1, window_bounds = array<i64: 1024, 512>}, {transform_indices = @transform_2, window_bounds = array<i64: 1, 512>}, {transform_indices = @transform_3, window_bounds = array<i64: 1, 512>}, {transform_indices = @transform_4, window_bounds = array<i64: 1, 512>}, {transform_indices = @transform_5, window_bounds = array<i64: 512, 256>}, {pipeline_mode = #tpu.pipeline_mode<synchronous>, transform_indices = @transform_6, window_bounds = array<i64: 16, 256>}]} {
    %c0_i32 = arith.constant 0 : i32
    %0 = arith.cmpi eq, %arg1, %c0_i32 : i32
    %1 = arith.extui %0 : i1 to i32
    %c0_i32_0 = arith.constant 0 : i32
    %2 = arith.cmpi ne, %1, %c0_i32_0 : i32
    scf.if %2 {
      %cst_10 = arith.constant 0.000000e+00 : f32
      %12 = vector.broadcast %cst_10 : f32 to vector<16x512xf32>
      %c0_11 = arith.constant 0 : index
      %c0_12 = arith.constant 0 : index
      %13 = vector.load %arg9[%c0_11, %c0_12] : memref<16x512xf32, #tpu.memory_space<vmem>>, vector<16x512xf32>
      tpu.vector_store %arg9[%c0_11, %c0_12], %12 {strides = array<i32>} : memref<16x512xf32, #tpu.memory_space<vmem>>, vector<16x512xf32>,
    } else {
    }
    %c0 = arith.constant 0 : index
    %c0_1 = arith.constant 0 : index
    %3 = vector.load %arg2[%c0, %c0_1] : memref<16x1024xbf16, #tpu.memory_space<vmem>>, vector<16x1024xbf16>
    %c0_2 = arith.constant 0 : index
    %c0_3 = arith.constant 0 : index
    %4 = vector.load %arg9[%c0_2, %c0_3] : memref<16x512xf32, #tpu.memory_space<vmem>>, vector<16x512xf32>
    %c0_4 = arith.constant 0 : index
    %c0_5 = arith.constant 0 : index
    %5 = vector.load %arg3[%c0_4, %c0_5] : memref<1024x512xbf16, #tpu.memory_space<vmem>>, vector<1024x512xbf16>
    %cst = arith.constant dense<0.000000e+00> : vector<16x512xf32>
    %6 = tpu.matmul %3, %5, %cst {dimension_numbers = #tpu.dot_dimension_numbers<[1], [0], [0], [1], [0, 0, 1, 1], [], []>} : vector<16x1024xbf16>, vector<1024x512xbf16>, vector<16x512xf32> -> vector<16x512xf32>
    %7 = arith.addf %4, %6 : vector<16x512xf32>
    %c0_6 = arith.constant 0 : index
    %c0_7 = arith.constant 0 : index
    %8 = vector.load %arg9[%c0_6, %c0_7] : memref<16x512xf32, #tpu.memory_space<vmem>>, vector<16x512xf32>
    tpu.vector_store %arg9[%c0_6, %c0_7], %7 {strides = array<i32>} : memref<16x512xf32, #tpu.memory_space<vmem>>, vector<16x512xf32>,
    %c0_i32_8 = arith.constant 0 : i32
    %9 = arith.cmpi eq, %arg1, %c0_i32_8 : i32
    %10 = arith.extui %9 : i1 to i32
    %c0_i32_9 = arith.constant 0 : i32
    %11 = arith.cmpi ne, %10, %c0_i32_9 : i32
    scf.if %11 {
      %c0_10 = arith.constant 0 : index
      %c0_11 = arith.constant 0 : index
      %12 = vector.load %arg9[%c0_10, %c0_11] : memref<16x512xf32, #tpu.memory_space<vmem>>, vector<16x512xf32>
      %c0_12 = arith.constant 0 : index
      %c0_13 = arith.constant 0 : index
      %13 = vector.load %arg4[%c0_12, %c0_13] : memref<1x512xf32, #tpu.memory_space<vmem>>, vector<1x512xf32>
      %14 = vector.broadcast %13 : vector<1x512xf32> to vector<16x512xf32>
      %15 = arith.addf %12, %14 : vector<16x512xf32>
      %16 = tpu.iota {dimensions = array<i32: 0>} : vector<16x512xi32>
      %c2_i32 = arith.constant 2 : i32
      %17 = vector.broadcast %c2_i32 : i32 to vector<16x512xi32>
      %18 = arith.cmpi slt, %16, %17 : vector<16x512xi32>
      %19 = arith.extui %18 : vector<16x512xi1> to vector<16x512xi32>
      %20 = arith.sitofp %19 : vector<16x512xi32> to vector<16x512xf32>
      %21 = arith.mulf %15, %20 : vector<16x512xf32>
      %cst_14 = arith.constant dense<0.000000e+00> : vector<512xf32>
      %22 = vector.multi_reduction <add>, %21, %cst_14 [0] : vector<16x512xf32> to vector<512xf32>
      %23 = vector.shape_cast %22 : vector<512xf32> to vector<1x512xf32>
      %cst_15 = arith.constant 5.000000e-01 : f32
      %24 = vector.broadcast %cst_15 : f32 to vector<1x512xf32>
      %25 = arith.mulf %23, %24 : vector<1x512xf32>
      %26 = vector.broadcast %25 : vector<1x512xf32> to vector<16x512xf32>
      %27 = arith.subf %15, %26 : vector<16x512xf32>
      %28 = arith.mulf %27, %20 : vector<16x512xf32>
      %29 = arith.mulf %28, %28 : vector<16x512xf32>
      %cst_16 = arith.constant dense<0.000000e+00> : vector<512xf32>
      %30 = vector.multi_reduction <add>, %29, %cst_16 [0] : vector<16x512xf32> to vector<512xf32>
      %31 = vector.shape_cast %30 : vector<512xf32> to vector<1x512xf32>
      %cst_17 = arith.constant 5.000000e-01 : f32
      %32 = vector.broadcast %cst_17 : f32 to vector<1x512xf32>
      %33 = arith.mulf %31, %32 : vector<1x512xf32>
      %c0_18 = arith.constant 0 : index
      %c0_19 = arith.constant 0 : index
      %34 = vector.load %arg5[%c0_18, %c0_19] : memref<1x512xf32, #tpu.memory_space<vmem>>, vector<1x512xf32>
      %cst_20 = arith.constant 9.99999974E-6 : f32
      %35 = vector.broadcast %cst_20 : f32 to vector<1x512xf32>
      %36 = arith.addf %33, %35 : vector<1x512xf32>
      %37 = math.rsqrt %36 : vector<1x512xf32>
      %38 = arith.mulf %34, %37 : vector<1x512xf32>
      %c0_21 = arith.constant 0 : index
      %c0_22 = arith.constant 0 : index
      %39 = vector.load %arg6[%c0_21, %c0_22] : memref<1x512xf32, #tpu.memory_space<vmem>>, vector<1x512xf32>
      %40 = arith.mulf %25, %38 : vector<1x512xf32>
      %41 = arith.subf %39, %40 : vector<1x512xf32>
      %42 = vector.broadcast %38 : vector<1x512xf32> to vector<16x512xf32>
      %43 = arith.mulf %15, %42 : vector<16x512xf32>
      %44 = vector.broadcast %41 : vector<1x512xf32> to vector<16x512xf32>
      %45 = arith.addf %43, %44 : vector<16x512xf32>
      %cst_23 = arith.constant 2.000000e-01 : f32
      %46 = vector.broadcast %cst_23 : f32 to vector<16x512xf32>
      %47 = arith.mulf %46, %45 : vector<16x512xf32>
      %48 = arith.maximumf %45, %47 : vector<16x512xf32>
      %49 = arith.truncf %48 : vector<16x512xf32> to vector<16x512xbf16>
      %c0_24 = arith.constant 0 : index
      %c0_25 = arith.constant 0 : index
      %50 = vector.load %arg7[%c0_24, %c0_25] : memref<512x256xbf16, #tpu.memory_space<vmem>>, vector<512x256xbf16>
      %cst_26 = arith.constant dense<0.000000e+00> : vector<16x256xf32>
      %51 = tpu.matmul %49, %50, %cst_26 {dimension_numbers = #tpu.dot_dimension_numbers<[1], [0], [0], [1], [0, 0, 1, 1], [], []>} : vector<16x512xbf16>, vector<512x256xbf16>, vector<16x256xf32> -> vector<16x256xf32>
      %c0_27 = arith.constant 0 : index
      %c0_28 = arith.constant 0 : index
      %52 = vector.load %arg8[%c0_27, %c0_28] : memref<16x256xf32, #tpu.memory_space<vmem>>, vector<16x256xf32>
      tpu.vector_store %arg8[%c0_27, %c0_28], %51 {strides = array<i32>} : memref<16x256xf32, #tpu.memory_space<vmem>>, vector<16x256xf32>,
    } else {
    }
    return
  }
  func.func @transform_0(%arg0: i32, %arg1: i32) -> (i32, i32) {
    %c0_i32 = arith.constant 0 : i32
    %c0_i32_0 = arith.constant 0 : i32
    %c0_i32_1 = arith.constant 0 : i32
    return %c0_i32, %c0_i32_0 : i32, i32
  }
  func.func @transform_1(%arg0: i32, %arg1: i32) -> (i32, i32) {
    %c0_i32 = arith.constant 0 : i32
    return %arg1, %arg0 : i32, i32
  }
  func.func @transform_2(%arg0: i32, %arg1: i32) -> (i32, i32) {
    %c0_i32 = arith.constant 0 : i32
    %c0_i32_0 = arith.constant 0 : i32
    return %c0_i32, %arg0 : i32, i32
  }
  func.func @transform_3(%arg0: i32, %arg1: i32) -> (i32, i32) {
    %c0_i32 = arith.constant 0 : i32
    %c0_i32_0 = arith.constant 0 : i32
    return %c0_i32, %arg0 : i32, i32
  }
  func.func @transform_4(%arg0: i32, %arg1: i32) -> (i32, i32) {
    %c0_i32 = arith.constant 0 : i32
    %c0_i32_0 = arith.constant 0 : i32
    return %c0_i32, %arg0 : i32, i32
  }
  func.func @transform_5(%arg0: i32, %arg1: i32) -> (i32, i32) {
    %c0_i32 = arith.constant 0 : i32
    %c0_i32_0 = arith.constant 0 : i32
    return %arg0, %c0_i32 : i32, i32
  }
  func.func @transform_6(%arg0: i32, %arg1: i32) -> (i32, i32) {
    %c0_i32 = arith.constant 0 : i32
    %c0_i32_0 = arith.constant 0 : i32
    %c0_i32_1 = arith.constant 0 : i32
    return %c0_i32, %c0_i32_0 : i32, i32
  }
}

</mosaic_0001>

<bundles_post_ra>
// kernel: mlps_forward.1
= control target key start
LH: loop header
LB: loop body
LE: loop exit
PB: predicated region body
PF: predicated region fallthrough
CT: control target
= control target key end

     0   :  { %11 = vsyncpa [#allocation4], 0  ;;  %s3917_s0 = inlined_call_operand.vmem [shape: bf16[16,1024], index: 0, kind: input, shape index: {}]   ;;  %s3918_s1 = inlined_call_operand.hbm [shape: bf16[1024,512], index: 1, kind: input, shape index: {}]   ;;  %s3919_s2 = inlined_call_operand.vmem [shape: f32[1,512], index: 2, kind: input, shape index: {}]   ;;  %s3920_s3 = inlined_call_operand.vmem [shape: f32[1,512], index: 3, kind: input, shape index: {}]   ;;  %s3921_s4 = inlined_call_operand.vmem [shape: f32[1,512], index: 4, kind: input, shape index: {}]   ;;  %s3922_s5 = inlined_call_operand.hbm [shape: bf16[512,256], index: 5, kind: input, shape index: {}]   ;;  %s3923_s6 = inlined_call_operand.vmem [shape: f32[16,256], index: 6, kind: output, shape index: {}]  }
   0x1   :  { %12 = vsyncpa [#allocation6], 0  ;;  %s3662_s21 = smov [#allocation3]  }
   0x2   :  { %s20_s22 = sshll.u32 %s3662_s21, 4  ;;  %s21_s22 = int_to_ptr.vmem [resolvable:$true] %s20_s22 }
   0x3   :  { %s3626_s23 = scalar_lea.vmem %s21_s22, 32768  ;;  %p3631_p1 = scmp.lt.s32.totalorder %s21_s22, %s21_s22 }
   0x4   :  { %p3627_p0 = scmp.ne.s32.totalorder %s21_s22, %s3626_s23  ;;  %p3632_p2 = scmp.lt.s32.totalorder %s3626_s23, %s3626_s23 }
   0x6   :  { %p3633_p3 = por %p3632_p2, %p3631_p1 }
   0x8   :  { %p3634_p4 = pnand %p3633_p3, %p3627_p0 }
   0xa   :  { %3637 = shalt.err (!%p3634_p4)
}
   0xb   :  { %s3663_s24 = smov 256   ;;  %s3664_s25 = smov 16  }
   0xc   :  { %26 = dma.hbm_to_vmem [thread:$0]  %s3918_s1, 32768, %s21_s22, [#allocation4], %s3663_s24, %s3663_s24, %s3664_s25  }
   0xd   :  { %s3665_s28 = smov [#allocation5]  }
   0xe   :  { %s38_s29 = sshll.u32 %s3665_s28, 4  ;;  %s39_s29 = int_to_ptr.vmem [resolvable:$true] %s38_s29 }
   0xf   :  { %s3646_s30 = scalar_lea.vmem %s39_s29, 8192  ;;  %p3651_p6 = scmp.lt.s32.totalorder %s39_s29, %s39_s29 }
  0x10   :  { %p3647_p5 = scmp.ne.s32.totalorder %s39_s29, %s3646_s30  ;;  %p3652_p7 = scmp.lt.s32.totalorder %s3646_s30, %s3646_s30 }
  0x12   :  { %p3653_p8 = por %p3652_p7, %p3651_p6 }
  0x14   :  { %p3654_p9 = pnand %p3653_p8, %p3647_p5 }
  0x16   :  { %3657 = shalt.err (!%p3654_p9)
}
  0x17   :  { %s3666_s7 = smov 128   ;;  %s3667_s8 = smov 8  }
  0x18   :  { %44 = dma.hbm_to_vmem [thread:$0]  %s3922_s5, 8192, %s39_s29, [#allocation6], %s3666_s7, %s3666_s7, %s3667_s8  }
  0x19   :  { %3658 = dma.done.wait [#allocation4], 32768  }
  0x1a   :  { %3659 = vsyncadd [#allocation4], 4294934528 }
  0x1b   :  { %3660 = dma.done.wait [#allocation6], 8192  }
  0x1c   :  { %3661 = vsyncadd [#allocation6], 4294959104  ;;  %v3130_v0 = vld [vmem:[#allocation3 + $0xe4] ss:$16 sps:$4 sm:$0xff]   ;;  %v3134_v2 = vld [vmem:[#allocation3 + $0xe0] ss:$16 sps:$4 sm:$0xff]  }
  0x1d   :  { %v3132_v1 = vld [vmem:[#allocation3 + $0x2e4] ss:$16 sps:$4 sm:$0xff]   ;;  %1655 = vmatprep.subr.bf16.mxu0 %v3130_v0  ;;  %v3135_v3 = vld [vmem:[#allocation3 + $0x2e0] ss:$16 sps:$4 sm:$0xff]   ;;  %v64_v50 = vld [vmem:[%s3917_s0 + $0x8] sm:$0xff] }
  0x1e   :  { %1698 = vmatprep.subr.bf16.mxu1 %v3132_v1  ;;  %v3136_v4 = vld [vmem:[#allocation3 + $0xc4] ss:$16 sps:$4 sm:$0xff]   ;;  %1656 = vmatpush1.bf16.msra.mxu0 %v3134_v2  ;;  %v3140_v6 = vld [vmem:[#allocation3 + $0xc0] ss:$16 sps:$4 sm:$0xff]   ;;  %v68_v51 = vld [vmem:[%s3917_s0 + $0x28] sm:$0xff] }
  0x1f   :  { %1699 = vmatpush1.bf16.msra.mxu1 %v3135_v3  ;;  %v3138_v5 = vld [vmem:[#allocation3 + $0x2c4] ss:$16 sps:$4 sm:$0xff]   ;;  %1657 = vmatprep.subr.bf16.mxu0 %v3136_v4  ;;  %v3141_v7 = vld [vmem:[#allocation3 + $0x2c0] ss:$16 sps:$4 sm:$0xff]   ;;  %v3725_v55 = vcombine.high %v64_v50, %v68_v51 }
  0x20   :  { %1700 = vmatprep.subr.bf16.mxu1 %v3138_v5  ;;  %v3142_v8 = vld [vmem:[#allocation3 + $0xa4] ss:$16 sps:$4 sm:$0xff]   ;;  %v3146_v10 = vld [vmem:[#allocation3 + $0xa0] ss:$16 sps:$4 sm:$0xff]  }
  0x21   :  { %v3144_v9 = vld [vmem:[#allocation3 + $0x2a4] ss:$16 sps:$4 sm:$0xff]   ;;  %v3147_v11 = vld [vmem:[#allocation3 + $0x2a0] ss:$16 sps:$4 sm:$0xff]   ;;  %1730 = vmatprep.mubr.bf16.mxu1 %v3725_v55 }
  0x22   :  { %1658 = vmatpush1.bf16.msra.mxu0 %v3140_v6  ;;  %v3148_v12 = vld [vmem:[#allocation3 + $0x84] ss:$16 sps:$4 sm:$0xff]   ;;  %v3152_v14 = vld [vmem:[#allocation3 + $0x80] ss:$16 sps:$4 sm:$0xff]  }
  0x23   :  { %1701 = vmatpush1.bf16.msra.mxu1 %v3141_v7  ;;  %1659 = vmatprep.subr.bf16.mxu0 %v3142_v8  ;;  %v3150_v13 = vld [vmem:[#allocation3 + $0x284] ss:$16 sps:$4 sm:$0xff]   ;;  %v3153_v15 = vld [vmem:[#allocation3 + $0x280] ss:$16 sps:$4 sm:$0xff]  }
  0x24   :  { %1702 = vmatprep.subr.bf16.mxu1 %v3144_v9  ;;  %v3154_v16 = vld [vmem:[#allocation3 + $0x64] ss:$16 sps:$4 sm:$0xff]   ;;  %v3158_v18 = vld [vmem:[#allocation3 + $0x60] ss:$16 sps:$4 sm:$0xff]   ;;  %v3731_v9 = vcombine.low %v64_v50, %v68_v51 }
  0x25   :  { %v3156_v17 = vld [vmem:[#allocation3 + $0x264] ss:$16 sps:$4 sm:$0xff]   ;;  %v3159_v19 = vld [vmem:[#allocation3 + $0x260] ss:$16 sps:$4 sm:$0xff]  }
  0x26   :  { %1660 = vmatpush1.bf16.msra.mxu0 %v3146_v10  ;;  %v3160_v20 = vld [vmem:[#allocation3 + $0x44] ss:$16 sps:$4 sm:$0xff]   ;;  %v3164_v22 = vld [vmem:[#allocation3 + $0x40] ss:$16 sps:$4 sm:$0xff]  }
  0x27   :  { %1703 = vmatpush1.bf16.msra.mxu1 %v3147_v11  ;;  %1661 = vmatprep.subr.bf16.mxu0 %v3148_v12  ;;  %v3162_v21 = vld [vmem:[#allocation3 + $0x244] ss:$16 sps:$4 sm:$0xff]   ;;  %v3165_v23 = vld [vmem:[#allocation3 + $0x240] ss:$16 sps:$4 sm:$0xff]  }
  0x28   :  { %1704 = vmatprep.subr.bf16.mxu1 %v3150_v13  ;;  %v3166_v24 = vld [vmem:[#allocation3 + $0x24] ss:$16 sps:$4 sm:$0xff]   ;;  %v3170_v26 = vld [vmem:[#allocation3 + $0x20] ss:$16 sps:$4 sm:$0xff]  }
  0x29   :  { %v3168_v25 = vld [vmem:[#allocation3 + $0x224] ss:$16 sps:$4 sm:$0xff]   ;;  %v3171_v27 = vld [vmem:[#allocation3 + $0x220] ss:$16 sps:$4 sm:$0xff]  }
  0x2a   :  { %1662 = vmatpush1.bf16.msra.mxu0 %v3152_v14  ;;  %v3172_v28 = vld [vmem:[#allocation3 + $0x4] ss:$16 sps:$4 sm:$0xff]   ;;  %v3176_v30 = vld [vmem:[#allocation3] ss:$16 sps:$4 sm:$0xff]  }
  0x2b   :  { %1705 = vmatpush1.bf16.msra.mxu1 %v3153_v15  ;;  %1663 = vmatprep.subr.bf16.mxu0 %v3154_v16  ;;  %v3174_v29 = vld [vmem:[#allocation3 + $0x204] ss:$16 sps:$4 sm:$0xff]   ;;  %v3177_v31 = vld [vmem:[#allocation3 + $0x200] ss:$16 sps:$4 sm:$0xff]  }
  0x2c   :  { %1706 = vmatprep.subr.bf16.mxu1 %v3156_v17  ;;  %v3178_v32 = vld [vmem:[#allocation3 + $0x1e4] ss:$16 sps:$4 sm:$0xff]   ;;  %v3182_v34 = vld [vmem:[#allocation3 + $0x1e0] ss:$16 sps:$4 sm:$0xff]  }
  0x2d   :  { %v3180_v33 = vld [vmem:[#allocation3 + $0x3e4] ss:$16 sps:$4 sm:$0xff]   ;;  %v3183_v35 = vld [vmem:[#allocation3 + $0x3e0] ss:$16 sps:$4 sm:$0xff]  }
  0x2e   :  { %1664 = vmatpush1.bf16.msra.mxu0 %v3158_v18  ;;  %v3184_v36 = vld [vmem:[#allocation3 + $0x1c4] ss:$16 sps:$4 sm:$0xff]   ;;  %v3188_v38 = vld [vmem:[#allocation3 + $0x1c0] ss:$16 sps:$4 sm:$0xff]  }
  0x2f   :  { %1707 = vmatpush1.bf16.msra.mxu1 %v3159_v19  ;;  %1665 = vmatprep.subr.bf16.mxu0 %v3160_v20  ;;  %v3186_v37 = vld [vmem:[#allocation3 + $0x3c4] ss:$16 sps:$4 sm:$0xff]   ;;  %v3189_v39 = vld [vmem:[#allocation3 + $0x3c0] ss:$16 sps:$4 sm:$0xff]  }
  0x30   :  { %1708 = vmatprep.subr.bf16.mxu1 %v3162_v21  ;;  %v3190_v40 = vld [vmem:[#allocation3 + $0x1a4] ss:$16 sps:$4 sm:$0xff]   ;;  %v3194_v42 = vld [vmem:[#allocation3 + $0x1a0] ss:$16 sps:$4 sm:$0xff]  }
  0x31   :  { %v3192_v41 = vld [vmem:[#allocation3 + $0x3a4] ss:$16 sps:$4 sm:$0xff]   ;;  %v3195_v43 = vld [vmem:[#allocation3 + $0x3a0] ss:$16 sps:$4 sm:$0xff]  }
  0x32   :  { %1666 = vmatpush1.bf16.msra.mxu0 %v3164_v22  ;;  %v3196_v44 = vld [vmem:[#allocation3 + $0x184] ss:$16 sps:$4 sm:$0xff]   ;;  %v3200_v46 = vld [vmem:[#allocation3 + $0x180] ss:$16 sps:$4 sm:$0xff]  }
  0x33   :  { %1709 = vmatpush1.bf16.msra.mxu1 %v3165_v23  ;;  %1667 = vmatprep.subr.bf16.mxu0 %v3166_v24  ;;  %v3198_v45 = vld [vmem:[#allocation3 + $0x384] ss:$16 sps:$4 sm:$0xff]   ;;  %v3201_v47 = vld [vmem:[#allocation3 + $0x380] ss:$16 sps:$4 sm:$0xff]  }
  0x34   :  { %1710 = vmatprep.subr.bf16.mxu1 %v3168_v25  ;;  %v63_v48 = vld [vmem:[%s3917_s0] sm:$0xff] }
  0x35   :  { %v67_v49 = vld [vmem:[%s3917_s0 + $0x20] sm:$0xff] }
  0x36   :  { %1668 = vmatpush1.bf16.msra.mxu0 %v3170_v26  ;;  %v3202_v52 = vld [vmem:[#allocation3 + $0x164] ss:$16 sps:$4 sm:$0xff]   ;;  %v3723_v53 = vcombine.high %v63_v48, %v67_v49  ;;  %v3206_v56 = vld [vmem:[#allocation3 + $0x160] ss:$16 sps:$4 sm:$0xff]   ;;  %v3729_v8 = vcombine.low %v63_v48, %v67_v49 }
  0x37   :  { %1711 = vmatpush1.bf16.msra.mxu1 %v3171_v27  ;;  %1669 = vmatprep.subr.bf16.mxu0 %v3172_v28  ;;  %v3204_v54 = vld [vmem:[#allocation3 + $0x364] ss:$16 sps:$4 sm:$0xff]   ;;  %v3207_v57 = vld [vmem:[#allocation3 + $0x360] ss:$16 sps:$4 sm:$0xff]  }
  0x38   :  { %1712 = vmatprep.subr.bf16.mxu1 %v3174_v29  ;;  %1687 = vmatprep.mubr.bf16.mxu0 %v3723_v53  ;;  %v3208_v58 = vld [vmem:[#allocation3 + $0x144] ss:$16 sps:$4 sm:$0xff]   ;;  %v3212_v60 = vld [vmem:[#allocation3 + $0x140] ss:$16 sps:$4 sm:$0xff]  }
  0x39   :  { %v3210_v59 = vld [vmem:[#allocation3 + $0x344] ss:$16 sps:$4 sm:$0xff]   ;;  %v3213_v61 = vld [vmem:[#allocation3 + $0x340] ss:$16 sps:$4 sm:$0xff]  }
  0x3a   :  { %1670 = vmatpush1.bf16.msra.mxu0 %v3176_v30  ;;  %v3214_v62 = vld [vmem:[#allocation3 + $0x124] ss:$16 sps:$4 sm:$0xff]   ;;  %v3218_v0 = vld [vmem:[#allocation3 + $0x120] ss:$16 sps:$4 sm:$0xff]  }
  0x3b   :  { %1713 = vmatpush1.bf16.msra.mxu1 %v3177_v31  ;;  %1671 = vmatprep.subr.bf16.mxu0 %v3178_v32  ;;  %v3216_v63 = vld [vmem:[#allocation3 + $0x324] ss:$16 sps:$4 sm:$0xff]   ;;  %v3219_v1 = vld [vmem:[#allocation3 + $0x320] ss:$16 sps:$4 sm:$0xff]  }
  0x3c   :  { %1714 = vmatprep.subr.bf16.mxu1 %v3180_v33  ;;  %v3220_v2 = vld [vmem:[#allocation3 + $0x104] ss:$16 sps:$4 sm:$0xff]   ;;  %v3224_v4 = vld [vmem:[#allocation3 + $0x100] ss:$16 sps:$4 sm:$0xff]  }
  0x3d   :  { %v3222_v3 = vld [vmem:[#allocation3 + $0x304] ss:$16 sps:$4 sm:$0xff]   ;;  %v3225_v5 = vld [vmem:[#allocation3 + $0x300] ss:$16 sps:$4 sm:$0xff]  }
  0x3e   :  { %1672 = vmatpush2.bf16.msra.mxu0 %v3182_v34  ;;  %v3228_v6 = vld [vmem:[#allocation3 + $0x4e4] ss:$16 sps:$4 sm:$0xff]   ;;  %v3226_v10 = vld [vmem:[#allocation3 + $0x4e0] ss:$16 sps:$4 sm:$0xff]  }
  0x3f   :  { %1715 = vmatpush2.bf16.msra.mxu1 %v3183_v35  ;;  %1673 = vmatprep.subr.bf16.mxu0 %v3184_v36  ;;  %v3231_v7 = vld [vmem:[#allocation3 + $0x6e4] ss:$16 sps:$4 sm:$0xff]   ;;  %v3229_v11 = vld [vmem:[#allocation3 + $0x6e0] ss:$16 sps:$4 sm:$0xff]  }
  0x40   :  { %1716 = vmatprep.subr.bf16.mxu1 %v3186_v37  ;;  %v3234_v12 = vld [vmem:[#allocation3 + $0x4c4] ss:$16 sps:$4 sm:$0xff]   ;;  %v3232_v14 = vld [vmem:[#allocation3 + $0x4c0] ss:$16 sps:$4 sm:$0xff]  }
  0x41   :  { %v3237_v13 = vld [vmem:[#allocation3 + $0x6c4] ss:$16 sps:$4 sm:$0xff]   ;;  %v3235_v15 = vld [vmem:[#allocation3 + $0x6c0] ss:$16 sps:$4 sm:$0xff]  }
  0x42   :  { %1674 = vmatpush2.bf16.msra.mxu0 %v3188_v38  ;;  %v3240_v16 = vld [vmem:[#allocation3 + $0x4a4] ss:$16 sps:$4 sm:$0xff]   ;;  %v3238_v18 = vld [vmem:[#allocation3 + $0x4a0] ss:$16 sps:$4 sm:$0xff]   ;;  %v3748_v38 = vld [vmem:[%s3917_s0 + $0x18] sm:$0xff] }
  0x43   :  { %1717 = vmatpush2.bf16.msra.mxu1 %v3189_v39  ;;  %1675 = vmatprep.subr.bf16.mxu0 %v3190_v40  ;;  %v3243_v17 = vld [vmem:[#allocation3 + $0x6a4] ss:$16 sps:$4 sm:$0xff]   ;;  %v3241_v19 = vld [vmem:[#allocation3 + $0x6a0] ss:$16 sps:$4 sm:$0xff]   ;;  %v3753_v39 = vld [vmem:[%s3917_s0 + $0x38] sm:$0xff] }
  0x44   :  { %1718 = vmatprep.subr.bf16.mxu1 %v3192_v41  ;;  %v3246_v20 = vld [vmem:[#allocation3 + $0x484] ss:$16 sps:$4 sm:$0xff]   ;;  %v3244_v22 = vld [vmem:[#allocation3 + $0x480] ss:$16 sps:$4 sm:$0xff]  }
  0x45   :  { %v3249_v21 = vld [vmem:[#allocation3 + $0x684] ss:$16 sps:$4 sm:$0xff]   ;;  %v3247_v23 = vld [vmem:[#allocation3 + $0x680] ss:$16 sps:$4 sm:$0xff]  }
  0x46   :  { %1676 = vmatpush2.bf16.msra.mxu0 %v3194_v42  ;;  %v3252_v24 = vld [vmem:[#allocation3 + $0x464] ss:$16 sps:$4 sm:$0xff]   ;;  %v3250_v26 = vld [vmem:[#allocation3 + $0x460] ss:$16 sps:$4 sm:$0xff]  }
  0x47   :  { %1719 = vmatpush2.bf16.msra.mxu1 %v3195_v43  ;;  %1677 = vmatprep.subr.bf16.mxu0 %v3196_v44  ;;  %v3255_v25 = vld [vmem:[#allocation3 + $0x664] ss:$16 sps:$4 sm:$0xff]   ;;  %v3253_v27 = vld [vmem:[#allocation3 + $0x660] ss:$16 sps:$4 sm:$0xff]   ;;  %v3761_v43 = vcombine.high %v3748_v38, %v3753_v39 }
  0x48   :  { %1720 = vmatprep.subr.bf16.mxu1 %v3198_v45  ;;  %v3258_v28 = vld [vmem:[#allocation3 + $0x444] ss:$16 sps:$4 sm:$0xff]   ;;  %v3256_v30 = vld [vmem:[#allocation3 + $0x440] ss:$16 sps:$4 sm:$0xff]  }
  0x49   :  { %v3261_v29 = vld [vmem:[#allocation3 + $0x644] ss:$16 sps:$4 sm:$0xff]   ;;  %v3259_v31 = vld [vmem:[#allocation3 + $0x640] ss:$16 sps:$4 sm:$0xff]  }
  0x4a   :  { %1678 = vmatpush2.bf16.msra.mxu0 %v3200_v46  ;;  %v3264_v32 = vld [vmem:[#allocation3 + $0x424] ss:$16 sps:$4 sm:$0xff]   ;;  %v3262_v34 = vld [vmem:[#allocation3 + $0x420] ss:$16 sps:$4 sm:$0xff]  }
  0x4b   :  { %1721 = vmatpush2.bf16.msra.mxu1 %v3201_v47  ;;  %1679 = vmatprep.subr.bf16.mxu0 %v3202_v52  ;;  %v3267_v33 = vld [vmem:[#allocation3 + $0x624] ss:$16 sps:$4 sm:$0xff]   ;;  %v3265_v35 = vld [vmem:[#allocation3 + $0x620] ss:$16 sps:$4 sm:$0xff]  }
  0x4c   :  { %1722 = vmatprep.subr.bf16.mxu1 %v3204_v54  ;;  %v3738_v36 = vld [vmem:[%s3917_s0 + $0x10] sm:$0xff] }
  0x4d   :  { %v3743_v37 = vld [vmem:[%s3917_s0 + $0x30] sm:$0xff] }
  0x4e   :  { %1680 = vmatpush2.bf16.msra.mxu0 %v3206_v56  ;;  %v3270_v40 = vld [vmem:[#allocation3 + $0x404] ss:$16 sps:$4 sm:$0xff]   ;;  %v3757_v41 = vcombine.high %v3738_v36, %v3743_v37  ;;  %v3268_v44 = vld [vmem:[#allocation3 + $0x400] ss:$16 sps:$4 sm:$0xff]  }
  0x4f   :  { %1723 = vmatpush2.bf16.msra.mxu1 %v3207_v57  ;;  %1681 = vmatprep.subr.bf16.mxu0 %v3208_v58  ;;  %v3273_v42 = vld [vmem:[#allocation3 + $0x604] ss:$16 sps:$4 sm:$0xff]   ;;  %v3271_v45 = vld [vmem:[#allocation3 + $0x600] ss:$16 sps:$4 sm:$0xff]  }
  0x50   :  { %1724 = vmatprep.subr.bf16.mxu1 %v3210_v59  ;;  %v3276_v46 = vld [vmem:[#allocation3 + $0x5e4] ss:$16 sps:$4 sm:$0xff]   ;;  %v3274_v48 = vld [vmem:[#allocation3 + $0x5e0] ss:$16 sps:$4 sm:$0xff]  }
  0x51   :  { %v3279_v47 = vld [vmem:[#allocation3 + $0x7e4] ss:$16 sps:$4 sm:$0xff]   ;;  %v3277_v49 = vld [vmem:[#allocation3 + $0x7e0] ss:$16 sps:$4 sm:$0xff]  }
  0x52   :  { %1682 = vmatpush2.bf16.msra.mxu0 %v3212_v60  ;;  %v3282_v50 = vld [vmem:[#allocation3 + $0x5c4] ss:$16 sps:$4 sm:$0xff]   ;;  %v3280_v52 = vld [vmem:[#allocation3 + $0x5c0] ss:$16 sps:$4 sm:$0xff]  }
  0x53   :  { %1725 = vmatpush2.bf16.msra.mxu1 %v3213_v61  ;;  %1683 = vmatprep.subr.bf16.mxu0 %v3214_v62  ;;  %v3285_v51 = vld [vmem:[#allocation3 + $0x7c4] ss:$16 sps:$4 sm:$0xff]   ;;  %v3283_v54 = vld [vmem:[#allocation3 + $0x7c0] ss:$16 sps:$4 sm:$0xff]  }
  0x54   :  { %1726 = vmatprep.subr.bf16.mxu1 %v3216_v63  ;;  %v3288_v56 = vld [vmem:[#allocation3 + $0x5a4] ss:$16 sps:$4 sm:$0xff]   ;;  %v3286_v58 = vld [vmem:[#allocation3 + $0x5a0] ss:$16 sps:$4 sm:$0xff]  }
  0x55   :  { %v3291_v57 = vld [vmem:[#allocation3 + $0x7a4] ss:$16 sps:$4 sm:$0xff]   ;;  %v3289_v59 = vld [vmem:[#allocation3 + $0x7a0] ss:$16 sps:$4 sm:$0xff]  }
  0x56   :  { %1684 = vmatpush2.bf16.msra.mxu0 %v3218_v0  ;;  %v3294_v60 = vld [vmem:[#allocation3 + $0x584] ss:$16 sps:$4 sm:$0xff]   ;;  %v3292_v62 = vld [vmem:[#allocation3 + $0x580] ss:$16 sps:$4 sm:$0xff]  }
  0x57   :  { %1727 = vmatpush2.bf16.msra.mxu1 %v3219_v1  ;;  %1685 = vmatprep.subr.bf16.mxu0 %v3220_v2  ;;  %v3297_v61 = vld [vmem:[#allocation3 + $0x784] ss:$16 sps:$4 sm:$0xff]   ;;  %v3295_v63 = vld [vmem:[#allocation3 + $0x780] ss:$16 sps:$4 sm:$0xff]  }
  0x58   :  { %1728 = vmatprep.subr.bf16.mxu1 %v3222_v3  ;;  %v3300_v0 = vld [vmem:[#allocation3 + $0x564] ss:$16 sps:$4 sm:$0xff]   ;;  %v3298_v2 = vld [vmem:[#allocation3 + $0x560] ss:$16 sps:$4 sm:$0xff]  }
  0x59   :  { %v3303_v1 = vld [vmem:[#allocation3 + $0x764] ss:$16 sps:$4 sm:$0xff]   ;;  %v3301_v3 = vld [vmem:[#allocation3 + $0x760] ss:$16 sps:$4 sm:$0xff]  }
  0x5a   :  { %1686 = vmatpush2.bf16.msra.mxu0 %v3224_v4  ;;  %v3306_v4 = vld [vmem:[#allocation3 + $0x544] ss:$16 sps:$4 sm:$0xff]  }
  0x5b   :  { %1729 = vmatpush2.bf16.msra.mxu1 %v3225_v5  ;;  %1741 = vmatprep.subr.bf16.mxu0 %v3228_v6  ;;  %v3309_v5 = vld [vmem:[#allocation3 + $0x744] ss:$16 sps:$4 sm:$0xff]   ;;  %v3304_v6 = vld [vmem:[#allocation3 + $0x540] ss:$16 sps:$4 sm:$0xff]  }
  0x5c   :  { %1784 = vmatprep.subr.bf16.mxu1 %v3231_v7  ;;  %v3307_v7 = vld [vmem:[#allocation3 + $0x740] ss:$16 sps:$4 sm:$0xff]  }
  0x5d   :  { %1688 = vmatmul.mubr.bf16.vlgmr.msra.gmra.mxu0 %v3729_v8 }
  0x5e   :  { %1731 = vmatmul.mubr.bf16.vlgmr.msra.gmra.mxu1 %v3731_v9  ;;  %1742 = vmatpush1.bf16.msra.mxu0 %v3226_v10  ;;  %v3312_v10 = vld [vmem:[#allocation3 + $0x524] ss:$16 sps:$4 sm:$0xff]  }
  0x5f   :  { %1785 = vmatpush1.bf16.msra.mxu1 %v3229_v11  ;;  %1743 = vmatprep.subr.bf16.mxu0 %v3234_v12  ;;  %v3315_v11 = vld [vmem:[#allocation3 + $0x724] ss:$16 sps:$4 sm:$0xff]   ;;  %v3310_v12 = vld [vmem:[#allocation3 + $0x520] ss:$16 sps:$4 sm:$0xff]  }
  0x60   :  { %1786 = vmatprep.subr.bf16.mxu1 %v3237_v13  ;;  %1773 = vmatprep.mubr.bf16.mxu0 %v3757_v41  ;;  %v3313_v13 = vld [vmem:[#allocation3 + $0x720] ss:$16 sps:$4 sm:$0xff]  }
  0x61   :  { %1816 = vmatprep.mubr.bf16.mxu1 %v3761_v43 }
  0x62   :  { %1744 = vmatpush1.bf16.msra.mxu0 %v3232_v14  ;;  %v3318_v14 = vld [vmem:[#allocation3 + $0x504] ss:$16 sps:$4 sm:$0xff]  }
  0x63   :  { %1787 = vmatpush1.bf16.msra.mxu1 %v3235_v15  ;;  %1745 = vmatprep.subr.bf16.mxu0 %v3240_v16  ;;  %v3321_v15 = vld [vmem:[#allocation3 + $0x704] ss:$16 sps:$4 sm:$0xff]   ;;  %v3316_v16 = vld [vmem:[#allocation3 + $0x500] ss:$16 sps:$4 sm:$0xff]  }
  0x64   :  { %1788 = vmatprep.subr.bf16.mxu1 %v3243_v17  ;;  %v3319_v17 = vld [vmem:[#allocation3 + $0x700] ss:$16 sps:$4 sm:$0xff]  }
  0x66   :  { %1746 = vmatpush1.bf16.msra.mxu0 %v3238_v18  ;;  %v3324_v18 = vld [vmem:[#allocation3 + $0xec] ss:$16 sps:$4 sm:$0xff]  }
  0x67   :  { %1789 = vmatpush1.bf16.msra.mxu1 %v3241_v19  ;;  %1747 = vmatprep.subr.bf16.mxu0 %v3246_v20  ;;  %v3327_v19 = vld [vmem:[#allocation3 + $0x2ec] ss:$16 sps:$4 sm:$0xff]   ;;  %v3767_v20 = vcombine.low %v3738_v36, %v3743_v37 }
  0x68   :  { %1790 = vmatprep.subr.bf16.mxu1 %v3249_v21  ;;  %v3771_v21 = vcombine.low %v3748_v38, %v3753_v39  ;;  %v3348_v36 = vld [vmem:[#allocation3 + $0x6c] ss:$16 sps:$4 sm:$0xff]   ;;  %v3346_v38 = vld [vmem:[#allocation3 + $0x68] ss:$16 sps:$4 sm:$0xff]  }
  0x69   :  { %v3351_v37 = vld [vmem:[#allocation3 + $0x26c] ss:$16 sps:$4 sm:$0xff]  }
  0x6a   :  { %1748 = vmatpush1.bf16.msra.mxu0 %v3244_v22  ;;  %v3322_v22 = vld [vmem:[#allocation3 + $0xe8] ss:$16 sps:$4 sm:$0xff]   ;;  %v3357_v39 = vld [vmem:[#allocation3 + $0x24c] ss:$16 sps:$4 sm:$0xff]  }
  0x6b   :  { %1791 = vmatpush1.bf16.msra.mxu1 %v3247_v23  ;;  %1749 = vmatprep.subr.bf16.mxu0 %v3252_v24  ;;  %v3325_v23 = vld [vmem:[#allocation3 + $0x2e8] ss:$16 sps:$4 sm:$0xff]   ;;  %v3330_v24 = vld [vmem:[#allocation3 + $0xcc] ss:$16 sps:$4 sm:$0xff]  }
  0x6c   :  { %1792 = vmatprep.subr.bf16.mxu1 %v3255_v25  ;;  %v3333_v25 = vld [vmem:[#allocation3 + $0x2cc] ss:$16 sps:$4 sm:$0xff]  }
  0x6e   :  { %1750 = vmatpush1.bf16.msra.mxu0 %v3250_v26  ;;  %v3328_v26 = vld [vmem:[#allocation3 + $0xc8] ss:$16 sps:$4 sm:$0xff]  }
  0x6f   :  { %1793 = vmatpush1.bf16.msra.mxu1 %v3253_v27  ;;  %1751 = vmatprep.subr.bf16.mxu0 %v3258_v28  ;;  %v3331_v27 = vld [vmem:[#allocation3 + $0x2c8] ss:$16 sps:$4 sm:$0xff]   ;;  %v3336_v28 = vld [vmem:[#allocation3 + $0xac] ss:$16 sps:$4 sm:$0xff]  }
  0x70   :  { %1794 = vmatprep.subr.bf16.mxu1 %v3261_v29  ;;  %v3339_v29 = vld [vmem:[#allocation3 + $0x2ac] ss:$16 sps:$4 sm:$0xff]  }
  0x72   :  { %1752 = vmatpush1.bf16.msra.mxu0 %v3256_v30  ;;  %v3334_v30 = vld [vmem:[#allocation3 + $0xa8] ss:$16 sps:$4 sm:$0xff]  }
  0x73   :  { %1795 = vmatpush1.bf16.msra.mxu1 %v3259_v31  ;;  %1753 = vmatprep.subr.bf16.mxu0 %v3264_v32  ;;  %v3337_v31 = vld [vmem:[#allocation3 + $0x2a8] ss:$16 sps:$4 sm:$0xff]   ;;  %v3342_v32 = vld [vmem:[#allocation3 + $0x8c] ss:$16 sps:$4 sm:$0xff]  }
  0x74   :  { %1796 = vmatprep.subr.bf16.mxu1 %v3267_v33  ;;  %v3345_v33 = vld [vmem:[#allocation3 + $0x28c] ss:$16 sps:$4 sm:$0xff]  }
  0x76   :  { %1754 = vmatpush1.bf16.msra.mxu0 %v3262_v34  ;;  %v3340_v34 = vld [vmem:[#allocation3 + $0x88] ss:$16 sps:$4 sm:$0xff]  }
  0x77   :  { %1797 = vmatpush1.bf16.msra.mxu1 %v3265_v35  ;;  %1755 = vmatprep.subr.bf16.mxu0 %v3270_v40  ;;  %v3343_v35 = vld [vmem:[#allocation3 + $0x288] ss:$16 sps:$4 sm:$0xff]  }
  0x78   :  { %1798 = vmatprep.subr.bf16.mxu1 %v3273_v42  ;;  %v3352_v40 = vld [vmem:[#allocation3 + $0x48] ss:$16 sps:$4 sm:$0xff]  }
  0x79   :  { %v3355_v42 = vld [vmem:[#allocation3 + $0x248] ss:$16 sps:$4 sm:$0xff]  }
  0x7a   :  { %1756 = vmatpush1.bf16.msra.mxu0 %v3268_v44  ;;  %v3360_v44 = vld [vmem:[#allocation3 + $0x2c] ss:$16 sps:$4 sm:$0xff]  }
  0x7b   :  { %1799 = vmatpush1.bf16.msra.mxu1 %v3271_v45  ;;  %1757 = vmatprep.subr.bf16.mxu0 %v3276_v46  ;;  %v3363_v45 = vld [vmem:[#allocation3 + $0x22c] ss:$16 sps:$4 sm:$0xff]   ;;  %v3358_v46 = vld [vmem:[#allocation3 + $0x28] ss:$16 sps:$4 sm:$0xff]  }
  0x7c   :  { %1800 = vmatprep.subr.bf16.mxu1 %v3279_v47  ;;  %v3361_v47 = vld [vmem:[#allocation3 + $0x228] ss:$16 sps:$4 sm:$0xff]  }
  0x7e   :  { %1758 = vmatpush2.bf16.msra.mxu0 %v3274_v48  ;;  %v3366_v48 = vld [vmem:[#allocation3 + $0xc] ss:$16 sps:$4 sm:$0xff]  }
  0x7f   :  { %1801 = vmatpush2.bf16.msra.mxu1 %v3277_v49  ;;  %1759 = vmatprep.subr.bf16.mxu0 %v3282_v50  ;;  %v3369_v49 = vld [vmem:[#allocation3 + $0x20c] ss:$16 sps:$4 sm:$0xff]   ;;  %v3364_v50 = vld [vmem:[#allocation3 + $0x8] ss:$16 sps:$4 sm:$0xff]  }
  0x80   :  { %1802 = vmatprep.subr.bf16.mxu1 %v3285_v51  ;;  %v3367_v51 = vld [vmem:[#allocation3 + $0x208] ss:$16 sps:$4 sm:$0xff]  }
  0x82   :  { %1760 = vmatpush2.bf16.msra.mxu0 %v3280_v52  ;;  %v3372_v52 = vld [vmem:[#allocation3 + $0x1ec] ss:$16 sps:$4 sm:$0xff]  }
  0x83   :  { %1803 = vmatpush2.bf16.msra.mxu1 %v3283_v54  ;;  %1761 = vmatprep.subr.bf16.mxu0 %v3288_v56  ;;  %v3375_v54 = vld [vmem:[#allocation3 + $0x3ec] ss:$16 sps:$4 sm:$0xff]   ;;  %v3370_v56 = vld [vmem:[#allocation3 + $0x1e8] ss:$16 sps:$4 sm:$0xff]  }
  0x84   :  { %1804 = vmatprep.subr.bf16.mxu1 %v3291_v57  ;;  %v3373_v57 = vld [vmem:[#allocation3 + $0x3e8] ss:$16 sps:$4 sm:$0xff]  }
  0x86   :  { %1762 = vmatpush2.bf16.msra.mxu0 %v3286_v58  ;;  %v3378_v58 = vld [vmem:[#allocation3 + $0x1cc] ss:$16 sps:$4 sm:$0xff]  }
  0x87   :  { %1805 = vmatpush2.bf16.msra.mxu1 %v3289_v59  ;;  %1763 = vmatprep.subr.bf16.mxu0 %v3294_v60  ;;  %v3381_v59 = vld [vmem:[#allocation3 + $0x3cc] ss:$16 sps:$4 sm:$0xff]   ;;  %v3376_v60 = vld [vmem:[#allocation3 + $0x1c8] ss:$16 sps:$4 sm:$0xff]  }
  0x88   :  { %1806 = vmatprep.subr.bf16.mxu1 %v3297_v61  ;;  %v3379_v61 = vld [vmem:[#allocation3 + $0x3c8] ss:$16 sps:$4 sm:$0xff]  }
  0x8a   :  { %1764 = vmatpush2.bf16.msra.mxu0 %v3292_v62  ;;  %v3384_v62 = vld [vmem:[#allocation3 + $0x1ac] ss:$16 sps:$4 sm:$0xff]  }
  0x8b   :  { %1807 = vmatpush2.bf16.msra.mxu1 %v3295_v63  ;;  %1765 = vmatprep.subr.bf16.mxu0 %v3300_v0  ;;  %v3387_v63 = vld [vmem:[#allocation3 + $0x3ac] ss:$16 sps:$4 sm:$0xff]   ;;  %v3382_v0 = vld [vmem:[#allocation3 + $0x1a8] ss:$16 sps:$4 sm:$0xff]  }
  0x8c   :  { %1808 = vmatprep.subr.bf16.mxu1 %v3303_v1  ;;  %v3385_v1 = vld [vmem:[#allocation3 + $0x3a8] ss:$16 sps:$4 sm:$0xff]  }
  0x8e   :  { %1766 = vmatpush2.bf16.msra.mxu0 %v3298_v2  ;;  %v3390_v2 = vld [vmem:[#allocation3 + $0x18c] ss:$16 sps:$4 sm:$0xff]  }
  0x8f   :  { %1809 = vmatpush2.bf16.msra.mxu1 %v3301_v3  ;;  %1767 = vmatprep.subr.bf16.mxu0 %v3306_v4  ;;  %v3393_v3 = vld [vmem:[#allocation3 + $0x38c] ss:$16 sps:$4 sm:$0xff]   ;;  %v3388_v4 = vld [vmem:[#allocation3 + $0x188] ss:$16 sps:$4 sm:$0xff]  }
  0x90   :  { %1810 = vmatprep.subr.bf16.mxu1 %v3309_v5  ;;  %v3391_v5 = vld [vmem:[#allocation3 + $0x388] ss:$16 sps:$4 sm:$0xff]  }
  0x92   :  { %1768 = vmatpush2.bf16.msra.mxu0 %v3304_v6  ;;  %v3396_v6 = vld [vmem:[#allocation3 + $0x16c] ss:$16 sps:$4 sm:$0xff]  }
  0x93   :  { %1811 = vmatpush2.bf16.msra.mxu1 %v3307_v7  ;;  %1769 = vmatprep.subr.bf16.mxu0 %v3312_v10  ;;  %v3399_v7 = vld [vmem:[#allocation3 + $0x36c] ss:$16 sps:$4 sm:$0xff]   ;;  %v3394_v10 = vld [vmem:[#allocation3 + $0x168] ss:$16 sps:$4 sm:$0xff]  }
  0x94   :  { %1812 = vmatprep.subr.bf16.mxu1 %v3315_v11  ;;  %v3397_v11 = vld [vmem:[#allocation3 + $0x368] ss:$16 sps:$4 sm:$0xff]  }
  0x96   :  { %1770 = vmatpush2.bf16.msra.mxu0 %v3310_v12  ;;  %v3402_v12 = vld [vmem:[#allocation3 + $0x14c] ss:$16 sps:$4 sm:$0xff]  }
  0x97   :  { %1813 = vmatpush2.bf16.msra.mxu1 %v3313_v13  ;;  %1771 = vmatprep.subr.bf16.mxu0 %v3318_v14  ;;  %v3405_v13 = vld [vmem:[#allocation3 + $0x34c] ss:$16 sps:$4 sm:$0xff]   ;;  %v3400_v14 = vld [vmem:[#allocation3 + $0x148] ss:$16 sps:$4 sm:$0xff]  }
  0x98   :  { %1814 = vmatprep.subr.bf16.mxu1 %v3321_v15  ;;  %v3403_v15 = vld [vmem:[#allocation3 + $0x348] ss:$16 sps:$4 sm:$0xff]  }
  0x9a   :  { %1772 = vmatpush2.bf16.msra.mxu0 %v3316_v16  ;;  %v3408_v16 = vld [vmem:[#allocation3 + $0x12c] ss:$16 sps:$4 sm:$0xff]  }
  0x9b   :  { %1815 = vmatpush2.bf16.msra.mxu1 %v3319_v17  ;;  %1827 = vmatprep.subr.bf16.mxu0 %v3324_v18  ;;  %v3411_v17 = vld [vmem:[#allocation3 + $0x32c] ss:$16 sps:$4 sm:$0xff]   ;;  %v3406_v18 = vld [vmem:[#allocation3 + $0x128] ss:$16 sps:$4 sm:$0xff]  }
  0x9c   :  { %1870 = vmatprep.subr.bf16.mxu1 %v3327_v19  ;;  %v3409_v19 = vld [vmem:[#allocation3 + $0x328] ss:$16 sps:$4 sm:$0xff]  }
  0x9d   :  { %1774 = vmatmul.mubr.bf16.vlgmr.msra.gmra.mxu0 %v3767_v20 }
  0x9e   :  { %1817 = vmatmul.mubr.bf16.vlgmr.msra.gmra.mxu1 %v3771_v21  ;;  %1828 = vmatpush1.bf16.msra.mxu0 %v3322_v22  ;;  %v3414_v22 = vld [vmem:[#allocation3 + $0x10c] ss:$16 sps:$4 sm:$0xff]  }
  0x9f   :  { %1871 = vmatpush1.bf16.msra.mxu1 %v3325_v23  ;;  %1829 = vmatprep.subr.bf16.mxu0 %v3330_v24  ;;  %v3417_v23 = vld [vmem:[#allocation3 + $0x30c] ss:$16 sps:$4 sm:$0xff]   ;;  %v3412_v24 = vld [vmem:[#allocation3 + $0x108] ss:$16 sps:$4 sm:$0xff]  }
  0xa0   :  { %1872 = vmatprep.subr.bf16.mxu1 %v3333_v25  ;;  %1859 = vmatprep.mubr.bf16.mxu0 %v3723_v53  ;;  %v3349_v53 = vld [vmem:[#allocation3 + $0x268] ss:$16 sps:$4 sm:$0xff]  }
  0xa1   :  { %1902 = vmatprep.mubr.bf16.mxu1 %v3725_v55  ;;  %v3354_v55 = vld [vmem:[#allocation3 + $0x4c] ss:$16 sps:$4 sm:$0xff]   ;;  %v3415_v25 = vld [vmem:[#allocation3 + $0x308] ss:$16 sps:$4 sm:$0xff]  }
  0xa2   :  { %1830 = vmatpush1.bf16.msra.mxu0 %v3328_v26  ;;  %v3420_v26 = vld [vmem:[#allocation3 + $0x4ec] ss:$16 sps:$4 sm:$0xff]  }
  0xa3   :  { %1873 = vmatpush1.bf16.msra.mxu1 %v3331_v27  ;;  %1831 = vmatprep.subr.bf16.mxu0 %v3336_v28  ;;  %v3423_v27 = vld [vmem:[#allocation3 + $0x6ec] ss:$16 sps:$4 sm:$0xff]   ;;  %v3418_v28 = vld [vmem:[#allocation3 + $0x4e8] ss:$16 sps:$4 sm:$0xff]  }
  0xa4   :  { %1874 = vmatprep.subr.bf16.mxu1 %v3339_v29  ;;  %v3421_v29 = vld [vmem:[#allocation3 + $0x6e8] ss:$16 sps:$4 sm:$0xff]  }
  0xa6   :  { %1832 = vmatpush1.bf16.msra.mxu0 %v3334_v30  ;;  %v3426_v30 = vld [vmem:[#allocation3 + $0x4cc] ss:$16 sps:$4 sm:$0xff]  }
  0xa7   :  { %1875 = vmatpush1.bf16.msra.mxu1 %v3337_v31  ;;  %1833 = vmatprep.subr.bf16.mxu0 %v3342_v32  ;;  %v3429_v31 = vld [vmem:[#allocation3 + $0x6cc] ss:$16 sps:$4 sm:$0xff]   ;;  %v3424_v32 = vld [vmem:[#allocation3 + $0x4c8] ss:$16 sps:$4 sm:$0xff]  }
  0xa8   :  { %1876 = vmatprep.subr.bf16.mxu1 %v3345_v33  ;;  %v3427_v33 = vld [vmem:[#allocation3 + $0x6c8] ss:$16 sps:$4 sm:$0xff]  }
  0xaa   :  { %1834 = vmatpush1.bf16.msra.mxu0 %v3340_v34  ;;  %v3432_v34 = vld [vmem:[#allocation3 + $0x4ac] ss:$16 sps:$4 sm:$0xff]  }
  0xab   :  { %1877 = vmatpush1.bf16.msra.mxu1 %v3343_v35  ;;  %1835 = vmatprep.subr.bf16.mxu0 %v3348_v36  ;;  %v3435_v35 = vld [vmem:[#allocation3 + $0x6ac] ss:$16 sps:$4 sm:$0xff]   ;;  %v3430_v36 = vld [vmem:[#allocation3 + $0x4a8] ss:$16 sps:$4 sm:$0xff]  }
  0xac   :  { %1878 = vmatprep.subr.bf16.mxu1 %v3351_v37  ;;  %v3433_v37 = vld [vmem:[#allocation3 + $0x6a8] ss:$16 sps:$4 sm:$0xff]  }
  0xae   :  { %1836 = vmatpush1.bf16.msra.mxu0 %v3346_v38  ;;  %v3436_v38 = vld [vmem:[#allocation3 + $0x488] ss:$16 sps:$4 sm:$0xff]  }
  0xaf   :  { %1879 = vmatpush1.bf16.msra.mxu1 %v3349_v53  ;;  %1837 = vmatprep.subr.bf16.mxu0 %v3354_v55  ;;  %v3439_v53 = vld [vmem:[#allocation3 + $0x688] ss:$16 sps:$4 sm:$0xff]   ;;  %v3444_v55 = vld [vmem:[#allocation3 + $0x46c] ss:$16 sps:$4 sm:$0xff]  }
  0xb0   :  { %1880 = vmatprep.subr.bf16.mxu1 %v3357_v39  ;;  %v3447_v39 = vld [vmem:[#allocation3 + $0x66c] ss:$16 sps:$4 sm:$0xff]  }
  0xb2   :  { %1838 = vmatpush1.bf16.msra.mxu0 %v3352_v40  ;;  %v3450_v40 = vld [vmem:[#allocation3 + $0x44c] ss:$16 sps:$4 sm:$0xff]  }
  0xb3   :  { %1881 = vmatpush1.bf16.msra.mxu1 %v3355_v42  ;;  %1839 = vmatprep.subr.bf16.mxu0 %v3360_v44  ;;  %v3453_v42 = vld [vmem:[#allocation3 + $0x64c] ss:$16 sps:$4 sm:$0xff]   ;;  %v3448_v44 = vld [vmem:[#allocation3 + $0x448] ss:$16 sps:$4 sm:$0xff]  }
  0xb4   :  { %1882 = vmatprep.subr.bf16.mxu1 %v3363_v45  ;;  %v3451_v45 = vld [vmem:[#allocation3 + $0x648] ss:$16 sps:$4 sm:$0xff]  }
  0xb6   :  { %1840 = vmatpush1.bf16.msra.mxu0 %v3358_v46  ;;  %v3456_v46 = vld [vmem:[#allocation3 + $0x42c] ss:$16 sps:$4 sm:$0xff]  }
  0xb7   :  { %1883 = vmatpush1.bf16.msra.mxu1 %v3361_v47  ;;  %1841 = vmatprep.subr.bf16.mxu0 %v3366_v48  ;;  %v3459_v47 = vld [vmem:[#allocation3 + $0x62c] ss:$16 sps:$4 sm:$0xff]   ;;  %v3454_v48 = vld [vmem:[#allocation3 + $0x428] ss:$16 sps:$4 sm:$0xff]  }
  0xb8   :  { %1884 = vmatprep.subr.bf16.mxu1 %v3369_v49  ;;  %v3457_v49 = vld [vmem:[#allocation3 + $0x628] ss:$16 sps:$4 sm:$0xff]  }
  0xba   :  { %1842 = vmatpush1.bf16.msra.mxu0 %v3364_v50  ;;  %v3462_v50 = vld [vmem:[#allocation3 + $0x40c] ss:$16 sps:$4 sm:$0xff]  }
  0xbb   :  { %1885 = vmatpush1.bf16.msra.mxu1 %v3367_v51  ;;  %1843 = vmatprep.subr.bf16.mxu0 %v3372_v52  ;;  %v3465_v51 = vld [vmem:[#allocation3 + $0x60c] ss:$16 sps:$4 sm:$0xff]   ;;  %v3460_v52 = vld [vmem:[#allocation3 + $0x408] ss:$16 sps:$4 sm:$0xff]  }
  0xbc   :  { %1886 = vmatprep.subr.bf16.mxu1 %v3375_v54  ;;  %v3463_v54 = vld [vmem:[#allocation3 + $0x608] ss:$16 sps:$4 sm:$0xff]  }
  0xbe   :  { %1844 = vmatpush2.bf16.msra.mxu0 %v3370_v56  ;;  %v3468_v56 = vld [vmem:[#allocation3 + $0x5ec] ss:$16 sps:$4 sm:$0xff]  }
  0xbf   :  { %1887 = vmatpush2.bf16.msra.mxu1 %v3373_v57  ;;  %1845 = vmatprep.subr.bf16.mxu0 %v3378_v58  ;;  %v3471_v57 = vld [vmem:[#allocation3 + $0x7ec] ss:$16 sps:$4 sm:$0xff]   ;;  %v3466_v58 = vld [vmem:[#allocation3 + $0x5e8] ss:$16 sps:$4 sm:$0xff]  }
  0xc0   :  { %1888 = vmatprep.subr.bf16.mxu1 %v3381_v59  ;;  %v3469_v59 = vld [vmem:[#allocation3 + $0x7e8] ss:$16 sps:$4 sm:$0xff]  }
  0xc2   :  { %1846 = vmatpush2.bf16.msra.mxu0 %v3376_v60  ;;  %v3474_v60 = vld [vmem:[#allocation3 + $0x5cc] ss:$16 sps:$4 sm:$0xff]  }
  0xc3   :  { %1889 = vmatpush2.bf16.msra.mxu1 %v3379_v61  ;;  %1847 = vmatprep.subr.bf16.mxu0 %v3384_v62  ;;  %v3477_v61 = vld [vmem:[#allocation3 + $0x7cc] ss:$16 sps:$4 sm:$0xff]   ;;  %v3472_v62 = vld [vmem:[#allocation3 + $0x5c8] ss:$16 sps:$4 sm:$0xff]  }
  0xc4   :  { %1890 = vmatprep.subr.bf16.mxu1 %v3387_v63  ;;  %v3475_v63 = vld [vmem:[#allocation3 + $0x7c8] ss:$16 sps:$4 sm:$0xff]  }
  0xc6   :  { %1848 = vmatpush2.bf16.msra.mxu0 %v3382_v0  ;;  %v3480_v0 = vld [vmem:[#allocation3 + $0x5ac] ss:$16 sps:$4 sm:$0xff]  }
  0xc7   :  { %1891 = vmatpush2.bf16.msra.mxu1 %v3385_v1  ;;  %1849 = vmatprep.subr.bf16.mxu0 %v3390_v2  ;;  %v3483_v1 = vld [vmem:[#allocation3 + $0x7ac] ss:$16 sps:$4 sm:$0xff]   ;;  %v3478_v2 = vld [vmem:[#allocation3 + $0x5a8] ss:$16 sps:$4 sm:$0xff]  }
  0xc8   :  { %1892 = vmatprep.subr.bf16.mxu1 %v3393_v3  ;;  %v3481_v3 = vld [vmem:[#allocation3 + $0x7a8] ss:$16 sps:$4 sm:$0xff]  }
  0xca   :  { %1850 = vmatpush2.bf16.msra.mxu0 %v3388_v4  ;;  %v3486_v4 = vld [vmem:[#allocation3 + $0x58c] ss:$16 sps:$4 sm:$0xff]  }
  0xcb   :  { %1893 = vmatpush2.bf16.msra.mxu1 %v3391_v5  ;;  %1851 = vmatprep.subr.bf16.mxu0 %v3396_v6  ;;  %v3489_v5 = vld [vmem:[#allocation3 + $0x78c] ss:$16 sps:$4 sm:$0xff]   ;;  %v3484_v6 = vld [vmem:[#allocation3 + $0x588] ss:$16 sps:$4 sm:$0xff]  }
  0xcc   :  { %1894 = vmatprep.subr.bf16.mxu1 %v3399_v7  ;;  %v3487_v7 = vld [vmem:[#allocation3 + $0x788] ss:$16 sps:$4 sm:$0xff]  }
  0xce   :  { %1852 = vmatpush2.bf16.msra.mxu0 %v3394_v10  ;;  %v3492_v10 = vld [vmem:[#allocation3 + $0x56c] ss:$16 sps:$4 sm:$0xff]  }
  0xcf   :  { %1895 = vmatpush2.bf16.msra.mxu1 %v3397_v11  ;;  %1853 = vmatprep.subr.bf16.mxu0 %v3402_v12  ;;  %v3495_v11 = vld [vmem:[#allocation3 + $0x76c] ss:$16 sps:$4 sm:$0xff]   ;;  %v3490_v12 = vld [vmem:[#allocation3 + $0x568] ss:$16 sps:$4 sm:$0xff]  }
  0xd0   :  { %1896 = vmatprep.subr.bf16.mxu1 %v3405_v13  ;;  %v3493_v13 = vld [vmem:[#allocation3 + $0x768] ss:$16 sps:$4 sm:$0xff]  }
  0xd2   :  { %1854 = vmatpush2.bf16.msra.mxu0 %v3400_v14  ;;  %v3498_v14 = vld [vmem:[#allocation3 + $0x54c] ss:$16 sps:$4 sm:$0xff]  }
  0xd3   :  { %1897 = vmatpush2.bf16.msra.mxu1 %v3403_v15  ;;  %1855 = vmatprep.subr.bf16.mxu0 %v3408_v16  ;;  %v3501_v15 = vld [vmem:[#allocation3 + $0x74c] ss:$16 sps:$4 sm:$0xff]   ;;  %v3496_v16 = vld [vmem:[#allocation3 + $0x548] ss:$16 sps:$4 sm:$0xff]  }
  0xd4   :  { %1898 = vmatprep.subr.bf16.mxu1 %v3411_v17  ;;  %v3499_v17 = vld [vmem:[#allocation3 + $0x748] ss:$16 sps:$4 sm:$0xff]  }
  0xd6   :  { %1856 = vmatpush2.bf16.msra.mxu0 %v3406_v18  ;;  %v3504_v18 = vld [vmem:[#allocation3 + $0x52c] ss:$16 sps:$4 sm:$0xff]  }
  0xd7   :  { %1899 = vmatpush2.bf16.msra.mxu1 %v3409_v19  ;;  %1857 = vmatprep.subr.bf16.mxu0 %v3414_v22  ;;  %v3507_v19 = vld [vmem:[#allocation3 + $0x72c] ss:$16 sps:$4 sm:$0xff]   ;;  %v3502_v22 = vld [vmem:[#allocation3 + $0x528] ss:$16 sps:$4 sm:$0xff]  }
  0xd8   :  { %1900 = vmatprep.subr.bf16.mxu1 %v3417_v23  ;;  %v3505_v23 = vld [vmem:[#allocation3 + $0x728] ss:$16 sps:$4 sm:$0xff]  }
  0xda   :  { %1858 = vmatpush2.bf16.msra.mxu0 %v3412_v24  ;;  %v3510_v24 = vld [vmem:[#allocation3 + $0x50c] ss:$16 sps:$4 sm:$0xff]  }
  0xdb   :  { %1901 = vmatpush2.bf16.msra.mxu1 %v3415_v25  ;;  %1913 = vmatprep.subr.bf16.mxu0 %v3420_v26  ;;  %v3513_v25 = vld [vmem:[#allocation3 + $0x70c] ss:$16 sps:$4 sm:$0xff]   ;;  %v3508_v26 = vld [vmem:[#allocation3 + $0x508] ss:$16 sps:$4 sm:$0xff]  }
  0xdc   :  { %1956 = vmatprep.subr.bf16.mxu1 %v3423_v27  ;;  %v3511_v27 = vld [vmem:[#allocation3 + $0x708] ss:$16 sps:$4 sm:$0xff]  }
  0xdd   :  { %1860 = vmatmul.mubr.bf16.vlgmr.msra.gmra.mxu0 %v3729_v8  ;;  %v3438_v8 = vld [vmem:[#allocation3 + $0x48c] ss:$16 sps:$4 sm:$0xff]  }
  0xde   :  { %1903 = vmatmul.mubr.bf16.vlgmr.msra.gmra.mxu1 %v3731_v9  ;;  %1914 = vmatpush1.bf16.msra.mxu0 %v3418_v28  ;;  %v3441_v9 = vld [vmem:[#allocation3 + $0x68c] ss:$16 sps:$4 sm:$0xff]  }
  0xdf   :  { %1957 = vmatpush1.bf16.msra.mxu1 %v3421_v29  ;;  %1915 = vmatprep.subr.bf16.mxu0 %v3426_v30  ;;  %v3516_v28 = vld [vmem:[#allocation5 + $0x74] ss:$8 sps:$4 sm:$0xff]   ;;  %v3514_v30 = vld [vmem:[#allocation5 + $0x70] ss:$8 sps:$4 sm:$0xff]  }
  0xe0   :  { %1958 = vmatprep.subr.bf16.mxu1 %v3429_v31  ;;  %1945 = vmatprep.mubr.bf16.mxu0 %v3757_v41  ;;  %v3442_v41 = vld [vmem:[#allocation3 + $0x468] ss:$16 sps:$4 sm:$0xff]   ;;  %v3519_v29 = vld [vmem:[#allocation5 + $0x174] ss:$8 sps:$4 sm:$0xff]  }
  0xe1   :  { %1988 = vmatprep.mubr.bf16.mxu1 %v3761_v43  ;;  %v3445_v43 = vld [vmem:[#allocation3 + $0x668] ss:$16 sps:$4 sm:$0xff]  }
  0xe2   :  { %1916 = vmatpush1.bf16.msra.mxu0 %v3424_v32  ;;  %v3517_v31 = vld [vmem:[#allocation5 + $0x170] ss:$8 sps:$4 sm:$0xff]   ;;  %v3522_v32 = vld [vmem:[#allocation5 + $0x64] ss:$8 sps:$4 sm:$0xff]  }
  0xe3   :  { %1959 = vmatpush1.bf16.msra.mxu1 %v3427_v33  ;;  %1917 = vmatprep.subr.bf16.mxu0 %v3432_v34  ;;  %v3525_v33 = vld [vmem:[#allocation5 + $0x164] ss:$8 sps:$4 sm:$0xff]   ;;  %v3520_v34 = vld [vmem:[#allocation5 + $0x60] ss:$8 sps:$4 sm:$0xff]  }
  0xe4   :  { %1960 = vmatprep.subr.bf16.mxu1 %v3435_v35  ;;  %v3523_v35 = vld [vmem:[#allocation5 + $0x160] ss:$8 sps:$4 sm:$0xff]  }
  0xe6   :  { %1918 = vmatpush1.bf16.msra.mxu0 %v3430_v36  ;;  %v3528_v36 = vld [vmem:[#allocation5 + $0x54] ss:$8 sps:$4 sm:$0xff]  }
  0xe7   :  { %1961 = vmatpush1.bf16.msra.mxu1 %v3433_v37  ;;  %1919 = vmatprep.subr.bf16.mxu0 %v3438_v8  ;;  %v3526_v37 = vld [vmem:[#allocation5 + $0x50] ss:$8 sps:$4 sm:$0xff]   ;;  %v3534_v8 = vld [vmem:[#allocation5 + $0x44] ss:$8 sps:$4 sm:$0xff]  }
  0xe8   :  { %1962 = vmatprep.subr.bf16.mxu1 %v3441_v9  ;;  %v3537_v9 = vld [vmem:[#allocation5 + $0x144] ss:$8 sps:$4 sm:$0xff]  }
  0xea   :  { %1920 = vmatpush1.bf16.msra.mxu0 %v3436_v38  ;;  %v3532_v38 = vld [vmem:[#allocation5 + $0x40] ss:$8 sps:$4 sm:$0xff]  }
  0xeb   :  { %1963 = vmatpush1.bf16.msra.mxu1 %v3439_v53  ;;  %1921 = vmatprep.subr.bf16.mxu0 %v3444_v55  ;;  %v3535_v53 = vld [vmem:[#allocation5 + $0x140] ss:$8 sps:$4 sm:$0xff]  }
  0xec   :  { %1964 = vmatprep.subr.bf16.mxu1 %v3447_v39  ;;  %v3540_v39 = vld [vmem:[#allocation5 + $0x34] ss:$8 sps:$4 sm:$0xff]  }
  0xee   :  { %1922 = vmatpush1.bf16.msra.mxu0 %v3442_v41  ;;  %v3543_v41 = vld [vmem:[#allocation5 + $0x134] ss:$8 sps:$4 sm:$0xff]  }
  0xef   :  { %1965 = vmatpush1.bf16.msra.mxu1 %v3445_v43  ;;  %1923 = vmatprep.subr.bf16.mxu0 %v3450_v40  ;;  %v3538_v43 = vld [vmem:[#allocation5 + $0x30] ss:$8 sps:$4 sm:$0xff]  }
  0xf0   :  { %1966 = vmatprep.subr.bf16.mxu1 %v3453_v42  ;;  %v3541_v40 = vld [vmem:[#allocation5 + $0x130] ss:$8 sps:$4 sm:$0xff]  }
  0xf2   :  { %1924 = vmatpush1.bf16.msra.mxu0 %v3448_v44  ;;  %v3546_v44 = vld [vmem:[#allocation5 + $0x24] ss:$8 sps:$4 sm:$0xff]  }
  0xf3   :  { %1967 = vmatpush1.bf16.msra.mxu1 %v3451_v45  ;;  %1925 = vmatprep.subr.bf16.mxu0 %v3456_v46  ;;  %v3549_v45 = vld [vmem:[#allocation5 + $0x124] ss:$8 sps:$4 sm:$0xff]  }
  0xf4   :  { %1968 = vmatprep.subr.bf16.mxu1 %v3459_v47  ;;  %v3544_v47 = vld [vmem:[#allocation5 + $0x20] ss:$8 sps:$4 sm:$0xff]  }
  0xf6   :  { %1926 = vmatpush1.bf16.msra.mxu0 %v3454_v48  ;;  %v3547_v48 = vld [vmem:[#allocation5 + $0x120] ss:$8 sps:$4 sm:$0xff]  }
  0xf7   :  { %1969 = vmatpush1.bf16.msra.mxu1 %v3457_v49  ;;  %1927 = vmatprep.subr.bf16.mxu0 %v3462_v50  ;;  %v3552_v50 = vld [vmem:[#allocation5 + $0x14] ss:$8 sps:$4 sm:$0xff]  }
  0xf8   :  { %1970 = vmatprep.subr.bf16.mxu1 %v3465_v51  ;;  %v3555_v51 = vld [vmem:[#allocation5 + $0x114] ss:$8 sps:$4 sm:$0xff]  }
  0xfa   :  { %1928 = vmatpush1.bf16.msra.mxu0 %v3460_v52 }
  0xfb   :  { %1971 = vmatpush1.bf16.msra.mxu1 %v3463_v54  ;;  %1929 = vmatprep.subr.bf16.mxu0 %v3468_v56  ;;  %v3550_v54 = vld [vmem:[#allocation5 + $0x10] ss:$8 sps:$4 sm:$0xff]  }
  0xfc   :  { %1972 = vmatprep.subr.bf16.mxu1 %v3471_v57  ;;  %v3553_v56 = vld [vmem:[#allocation5 + $0x110] ss:$8 sps:$4 sm:$0xff]  }
  0xfe   :  { %1930 = vmatpush2.bf16.msra.mxu0 %v3466_v58  ;;  %v3558_v58 = vld [vmem:[#allocation5 + $0x4] ss:$8 sps:$4 sm:$0xff]  }
  0xff   :  { %1973 = vmatpush2.bf16.msra.mxu1 %v3469_v59  ;;  %1931 = vmatprep.subr.bf16.mxu0 %v3474_v60  ;;  %v3561_v59 = vld [vmem:[#allocation5 + $0x104] ss:$8 sps:$4 sm:$0xff]  }
 0x100   :  { %1974 = vmatprep.subr.bf16.mxu1 %v3477_v61 }
 0x102   :  { %1932 = vmatpush2.bf16.msra.mxu0 %v3472_v62  ;;  %v3556_v62 = vld [vmem:[#allocation5] ss:$8 sps:$4 sm:$0xff]  }
 0x103   :  { %1975 = vmatpush2.bf16.msra.mxu1 %v3475_v63  ;;  %1933 = vmatprep.subr.bf16.mxu0 %v3480_v0  ;;  %v3559_v63 = vld [vmem:[#allocation5 + $0x100] ss:$8 sps:$4 sm:$0xff]   ;;  %v3564_v0 = vld [vmem:[#allocation5 + $0xf4] ss:$8 sps:$4 sm:$0xff]  }
 0x104   :  { %1976 = vmatprep.subr.bf16.mxu1 %v3483_v1  ;;  %v3567_v1 = vld [vmem:[#allocation5 + $0x1f4] ss:$8 sps:$4 sm:$0xff]  }
 0x106   :  { %1934 = vmatpush2.bf16.msra.mxu0 %v3478_v2 }
 0x107   :  { %1977 = vmatpush2.bf16.msra.mxu1 %v3481_v3  ;;  %1935 = vmatprep.subr.bf16.mxu0 %v3486_v4  ;;  %v3562_v4 = vld [vmem:[#allocation5 + $0xf0] ss:$8 sps:$4 sm:$0xff]  }
 0x108   :  { %1978 = vmatprep.subr.bf16.mxu1 %v3489_v5  ;;  %v3565_v5 = vld [vmem:[#allocation5 + $0x1f0] ss:$8 sps:$4 sm:$0xff]  }
 0x10a   :  { %1936 = vmatpush2.bf16.msra.mxu0 %v3484_v6 }
 0x10b   :  { %1979 = vmatpush2.bf16.msra.mxu1 %v3487_v7  ;;  %1937 = vmatprep.subr.bf16.mxu0 %v3492_v10  ;;  %v3570_v7 = vld [vmem:[#allocation5 + $0xe4] ss:$8 sps:$4 sm:$0xff]  }
 0x10c   :  { %1980 = vmatprep.subr.bf16.mxu1 %v3495_v11  ;;  %v3573_v10 = vld [vmem:[#allocation5 + $0x1e4] ss:$8 sps:$4 sm:$0xff]  }
 0x10e   :  { %1938 = vmatpush2.bf16.msra.mxu0 %v3490_v12  ;;  %v3568_v12 = vld [vmem:[#allocation5 + $0xe0] ss:$8 sps:$4 sm:$0xff]  }
 0x10f   :  { %1981 = vmatpush2.bf16.msra.mxu1 %v3493_v13  ;;  %1939 = vmatprep.subr.bf16.mxu0 %v3498_v14  ;;  %v3571_v13 = vld [vmem:[#allocation5 + $0x1e0] ss:$8 sps:$4 sm:$0xff]   ;;  %v2028_v14 = vlaneseq }
 0x110   :  { %1982 = vmatprep.subr.bf16.mxu1 %v3501_v15 }
 0x112   :  { %1940 = vmatpush2.bf16.msra.mxu0 %v3496_v16  ;;  %v3576_v16 = vld [vmem:[#allocation5 + $0xd4] ss:$8 sps:$4 sm:$0xff]  }
 0x113   :  { %1983 = vmatpush2.bf16.msra.mxu1 %v3499_v17  ;;  %1941 = vmatprep.subr.bf16.mxu0 %v3504_v18  ;;  %v3579_v17 = vld [vmem:[#allocation5 + $0x1d4] ss:$8 sps:$4 sm:$0xff]  }
 0x114   :  { %1984 = vmatprep.subr.bf16.mxu1 %v3507_v19  ;;  %v3574_v19 = vld [vmem:[#allocation5 + $0xd0] ss:$8 sps:$4 sm:$0xff]  }
 0x116   :  { %1942 = vmatpush2.bf16.msra.mxu0 %v3502_v22  ;;  %v3577_v22 = vld [vmem:[#allocation5 + $0x1d0] ss:$8 sps:$4 sm:$0xff]  }
 0x117   :  { %1985 = vmatpush2.bf16.msra.mxu1 %v3505_v23  ;;  %1943 = vmatprep.subr.bf16.mxu0 %v3510_v24  ;;  %v3789_v24 = vshrl.u32 %v2028_v14, 7 }
 0x118   :  { %1986 = vmatprep.subr.bf16.mxu1 %v3513_v25 }
 0x119   :  { %vm2059_vm0 = vcmp.lt.s32.totalorder %v3789_v24, 2 }
 0x11a   :  { %1944 = vmatpush2.bf16.msra.mxu0 %v3508_v26 }
 0x11b   :  { %1987 = vmatpush2.bf16.msra.mxu1 %v3511_v27  ;;  %2697 = vmatprep.subr.bf16.mxu0 %v3516_v28 }
 0x11c   :  { %2740 = vmatprep.subr.bf16.mxu1 %v3519_v29  ;;  %v3582_v29 = vld [vmem:[#allocation5 + $0xc4] ss:$8 sps:$4 sm:$0xff]  }
 0x11d   :  { %1946 = vmatmul.mubr.bf16.vlgmr.msra.gmra.mxu0 %v3767_v20  ;;  %v3531_v20 = vld [vmem:[#allocation5 + $0x154] ss:$8 sps:$4 sm:$0xff]   ;;  %v3783_v55 = vpop.f32.mrf.mxu0 }
 0x11e   :  { %1989 = vmatmul.mubr.bf16.vlgmr.msra.gmra.mxu1 %v3771_v21  ;;  %2698 = vmatpush1.bf16.msra.mxu0 %v3514_v30  ;;  %v3529_v21 = vld [vmem:[#allocation5 + $0x150] ss:$8 sps:$4 sm:$0xff]   ;;  %v3787_v46 = vpop.f32.mrf.mxu1  ;;  %v3585_v30 = vld [vmem:[#allocation5 + $0x1c4] ss:$8 sps:$4 sm:$0xff]  }
 0x11f   :  { %2741 = vmatpush1.bf16.msra.mxu1 %v3517_v31  ;;  %2699 = vmatprep.subr.bf16.mxu0 %v3522_v32  ;;  %v3785_v42 = vpop.f32.mrf.mxu0  ;;  %v3580_v31 = vld [vmem:[#allocation5 + $0xc0] ss:$8 sps:$4 sm:$0xff]  }
 0x120   :  { %2742 = vmatprep.subr.bf16.mxu1 %v3525_v33  ;;  %v1734_v52 = vpop.f32.mrf.mxu1  ;;  %v3583_v32 = vld [vmem:[#allocation5 + $0x1c0] ss:$8 sps:$4 sm:$0xff]   ;;  %v1733_v33 = vadd.f32 %v3787_v46, %v3783_v55  ;;  %v3594_v55 = vld [vmem:[#allocation5 + $0xa4] ss:$8 sps:$4 sm:$0xff]  }
 0x121   :  { %v1693_v49 = vpop.f32.mrf.mxu0  ;;  %v1735_v26 = vadd.f32 %v1734_v52, %v3785_v42 }
 0x122   :  { %2700 = vmatpush1.bf16.msra.mxu0 %v3520_v34  ;;  %v1736_v60 = vpop.f32.mrf.mxu1 }
 0x123   :  { %2743 = vmatpush1.bf16.msra.mxu1 %v3523_v35  ;;  %2701 = vmatprep.subr.bf16.mxu0 %v3528_v36  ;;  %v1695_v57 = vpop.f32.mrf.mxu0  ;;  %v1737_v27 = vadd.f32 %v1736_v60, %v1693_v49  ;;  %v3795_v35 = vsub.s32 1, %v3789_v24  ;;  %v3595_v49 = vld [vmem:[#allocation5 + $0x1a0] ss:$8 sps:$4 sm:$0xff]   ;;  %v3606_v60 = vld [vmem:[#allocation5 + $0x84] ss:$8 sps:$4 sm:$0xff]  }
 0x124   :  { %2744 = vmatprep.subr.bf16.mxu1 %v3531_v20  ;;  %v1738_v2 = vpop.f32.mrf.mxu1  ;;  %v3798_v20 = vsub.s32 0, %v3789_v24 }
 0x125   :  { %v1739_v23 = vadd.f32 %v1738_v2, %v1695_v57  ;;  %v3604_v2 = vld [vmem:[#allocation5 + $0x80] ss:$8 sps:$4 sm:$0xff]  }
 0x126   :  { %2702 = vmatpush1.bf16.msra.mxu0 %v3526_v37 }
 0x127   :  { %2745 = vmatpush1.bf16.msra.mxu1 %v3529_v21  ;;  %2703 = vmatprep.subr.bf16.mxu0 %v3534_v8  ;;  %v3586_v21 = vld [vmem:[#allocation5 + $0xb0] ss:$8 sps:$4 sm:$0xff]   ;;  %v3588_v8 = vld [vmem:[#allocation5 + $0xb4] ss:$8 sps:$4 sm:$0xff]  }
 0x128   :  { %2746 = vmatprep.subr.bf16.mxu1 %v3537_v9 }
 0x12a   :  { %2704 = vmatpush1.bf16.msra.mxu0 %v3532_v38 }
 0x12b   :  { %2747 = vmatpush1.bf16.msra.mxu1 %v3535_v53  ;;  %2705 = vmatprep.subr.bf16.mxu0 %v3540_v39  ;;  %v3589_v53 = vld [vmem:[#allocation5 + $0x1b0] ss:$8 sps:$4 sm:$0xff]   ;;  %v3591_v39 = vld [vmem:[#allocation5 + $0x1b4] ss:$8 sps:$4 sm:$0xff]  }
 0x12c   :  { %2748 = vmatprep.subr.bf16.mxu1 %v3543_v41  ;;  %v3803_v41 = vld [vmem:[%s3919_s2] sm:$0xf] }
 0x12d   :  { %v2035_v42 = vrot.slane %v3803_v41, %v3795_v35 }
 0x12e   :  { %2706 = vmatpush1.bf16.msra.mxu0 %v3538_v43  ;;  %v3597_v43 = vld [vmem:[#allocation5 + $0x1a4] ss:$8 sps:$4 sm:$0xff]  }
 0x12f   :  { %2749 = vmatpush1.bf16.msra.mxu1 %v3541_v40  ;;  %2707 = vmatprep.subr.bf16.mxu0 %v3546_v44 }
 0x130   :  { %2750 = vmatprep.subr.bf16.mxu1 %v3549_v45  ;;  %v3592_v45 = vld [vmem:[#allocation5 + $0xa0] ss:$8 sps:$4 sm:$0xff]  }
 0x132   :  { %2708 = vmatpush1.bf16.msra.mxu0 %v3544_v47  ;;  %v2031_v47 = vrot.slane %v3803_v41, %v3798_v20 }
 0x133   :  { %2751 = vmatpush1.bf16.msra.mxu1 %v3547_v48  ;;  %2709 = vmatprep.subr.bf16.mxu0 %v3552_v50  ;;  %v3600_v50 = vld [vmem:[#allocation5 + $0x94] ss:$8 sps:$4 sm:$0xff]  }
 0x134   :  { %2752 = vmatprep.subr.bf16.mxu1 %v3555_v51  ;;  %v3603_v51 = vld [vmem:[#allocation5 + $0x194] ss:$8 sps:$4 sm:$0xff]  }
 0x136   :  { %2710 = vmatpush1.bf16.msra.mxu0 %v3550_v54 }
 0x137   :  { %2753 = vmatpush1.bf16.msra.mxu1 %v3553_v56  ;;  %2711 = vmatprep.subr.bf16.mxu0 %v3558_v58  ;;  %v3598_v56 = vld [vmem:[#allocation5 + $0x90] ss:$8 sps:$4 sm:$0xff]  }
 0x138   :  { %2754 = vmatprep.subr.bf16.mxu1 %v3561_v59  ;;  %v3601_v59 = vld [vmem:[#allocation5 + $0x190] ss:$8 sps:$4 sm:$0xff]  }
 0x13a   :  { %2712 = vmatpush1.bf16.msra.mxu0 %v3556_v62 }
 0x13b   :  { %2755 = vmatpush1.bf16.msra.mxu1 %v3559_v63  ;;  %2713 = vmatprep.subr.bf16.mxu0 %v3564_v0  ;;  %v3609_v63 = vld [vmem:[#allocation5 + $0x184] ss:$8 sps:$4 sm:$0xff]  }
 0x13c   :  { %2756 = vmatprep.subr.bf16.mxu1 %v3567_v1 }
 0x13e   :  { %2714 = vmatpush2.bf16.msra.mxu0 %v3562_v4 }
 0x13f   :  { %2757 = vmatpush2.bf16.msra.mxu1 %v3565_v5  ;;  %2715 = vmatprep.subr.bf16.mxu0 %v3570_v7  ;;  %v3607_v5 = vld [vmem:[#allocation5 + $0x180] ss:$8 sps:$4 sm:$0xff]  }
 0x140   :  { %2758 = vmatprep.subr.bf16.mxu1 %v3573_v10 }
 0x142   :  { %2716 = vmatpush2.bf16.msra.mxu0 %v3568_v12 }
 0x143   :  { %2759 = vmatpush2.bf16.msra.mxu1 %v3571_v13  ;;  %2717 = vmatprep.subr.bf16.mxu0 %v3576_v16 }
 0x144   :  { %2760 = vmatprep.subr.bf16.mxu1 %v3579_v17 }
 0x146   :  { %2718 = vmatpush2.bf16.msra.mxu0 %v3574_v19 }
 0x147   :  { %2761 = vmatpush2.bf16.msra.mxu1 %v3577_v22  ;;  %2719 = vmatprep.subr.bf16.mxu0 %v3582_v29 }
 0x148   :  { %2762 = vmatprep.subr.bf16.mxu1 %v3585_v30 }
 0x14a   :  { %2720 = vmatpush2.bf16.msra.mxu0 %v3580_v31 }
 0x14b   :  { %2763 = vmatpush2.bf16.msra.mxu1 %v3583_v32  ;;  %2721 = vmatprep.subr.bf16.mxu0 %v3588_v8 }
 0x14c   :  { %2764 = vmatprep.subr.bf16.mxu1 %v3591_v39 }
 0x14e   :  { %2722 = vmatpush2.bf16.msra.mxu0 %v3586_v21 }
 0x14f   :  { %2765 = vmatpush2.bf16.msra.mxu1 %v3589_v53  ;;  %2723 = vmatprep.subr.bf16.mxu0 %v3594_v55 }
 0x150   :  { %2766 = vmatprep.subr.bf16.mxu1 %v3597_v43 }
 0x152   :  { %2724 = vmatpush2.bf16.msra.mxu0 %v3592_v45 }
 0x153   :  { %2767 = vmatpush2.bf16.msra.mxu1 %v3595_v49  ;;  %2725 = vmatprep.subr.bf16.mxu0 %v3600_v50 }
 0x154   :  { %2768 = vmatprep.subr.bf16.mxu1 %v3603_v51 }
 0x156   :  { %2726 = vmatpush2.bf16.msra.mxu0 %v3598_v56 }
 0x157   :  { %2769 = vmatpush2.bf16.msra.mxu1 %v3601_v59  ;;  %2727 = vmatprep.subr.bf16.mxu0 %v3606_v60 }
 0x158   :  { %2770 = vmatprep.subr.bf16.mxu1 %v3609_v63 }
 0x15a   :  { %2728 = vmatpush2.bf16.msra.mxu0 %v3604_v2 }
 0x15b   :  { %2771 = vmatpush2.bf16.msra.mxu1 %v3607_v5 }
 0x15d   :  { %v1775_v61 = vpop.f32.mrf.mxu0 }
 0x15e   :  { %v1818_v6 = vpop.f32.mrf.mxu1  ;;  %v1776_v9 = vadd.f32 %v1775_v61, %v1733_v33  ;;  %v3668_v61 = vmov 0.0  }
 0x15f   :  { %v1777_v3 = vpop.f32.mrf.mxu0  ;;  %v3819_v62 = vsel %vm2059_vm0, 1.0, %v3668_v61 }
 0x160   :  { %v1820_v15 = vpop.f32.mrf.mxu1  ;;  %v1778_v34 = vadd.f32 %v1777_v3, %v1735_v26  ;;  %v1819_v46 = vadd.f32 %v1818_v6, %v1776_v9 }
 0x161   :  { %v1779_v11 = vpop.f32.mrf.mxu0 }
 0x162   :  { %v1822_v25 = vpop.f32.mrf.mxu1  ;;  %v1780_v36 = vadd.f32 %v1779_v11, %v1737_v27  ;;  %v1821_v40 = vadd.f32 %v1820_v15, %v1778_v34  ;;  %v3816_v57 = vadd.f32 %v2031_v47, %v1819_v46  ;;  %v3829_v34 = vsub.s32 2, %v3789_v24 }
 0x163   :  { %v1781_v18 = vpop.f32.mrf.mxu0 }
 0x164   :  { %v1782_v28 = vadd.f32 %v1781_v18, %v1739_v23  ;;  %v1824_v37 = vpop.f32.mrf.mxu1  ;;  %v1823_v44 = vadd.f32 %v1822_v25, %v1780_v36  ;;  %v3812_v52 = vadd.f32 %v2035_v42, %v1821_v40  ;;  %v2065_v3 = vmul.f32 %v3819_v62, %v3816_v57 }
 0x166   :  { %v1825_v38 = vadd.f32 %v1824_v37, %v1782_v28  ;;  %v3814_v54 = vadd.f32 %v2031_v47, %v1823_v44  ;;  %v2066_v0 = vmul.f32 %v3819_v62, %v3812_v52  ;;  %v2039_v44 = vrot.slane %v3803_v41, %v3829_v34 }
 0x168   :  { %v3809_v48 = vadd.f32 %v2035_v42, %v1825_v38  ;;  %v2069_v1 = vmul.f32 0.0, %v3814_v54  ;;  %v3834_v38 = vsub.s32 3, %v3789_v24 }
 0x16a   :  { %v2070_v58 = vmul.f32 0.0, %v3809_v48  ;;  %v2073_v6 = vadd.f32 %v2069_v1, %v2065_v3 }
 0x16c   :  { %v2080_v4 = vadd.f32 %v2070_v58, %v2066_v0  ;;  %v2074_v10 = vrot.slane %v2073_v6, 4  ;;  %v2043_v58 = vrot.slane %v3803_v41, %v3834_v38 }
 0x16e   :  { %v2081_v7 = vrot.slane %v2080_v4, 4  ;;  %v2075_v12 = vadd.f32 %v2074_v10, %v2073_v6 }
 0x170   :  { %v2082_v11 = vadd.f32 %v2081_v7, %v2080_v4  ;;  %v2076_v14 = vrot.slane %v2075_v12, 2 }
 0x172   :  { %v2083_v13 = vrot.slane %v2082_v11, 2  ;;  %v2077_v18 = vadd.f32 %v2076_v14, %v2075_v12 }
 0x174   :  { %v2084_v15 = vadd.f32 %v2083_v13, %v2082_v11  ;;  %v2078_v25 = vrot.slane %v2077_v18, 1 }
 0x176   :  { %v2085_v19 = vrot.slane %v2084_v15, 1  ;;  %v2079_v29 = vadd.f32 %v2078_v25, %v2077_v18 }
 0x178   :  { %v2086_v26 = vadd.f32 %v2085_v19, %v2084_v15  ;;  %v3831_v36 = vmul.f32 0.5, %v2079_v29 }
 0x17a   :  { %v3826_v30 = vmul.f32 0.5, %v2086_v26  ;;  %v2105_v46 = vsub.f32 %v3816_v57, %v3831_v36  ;;  %v2109_v47 = vsub.f32 %v3814_v54, %v3831_v36 }
 0x17c   :  { %v2106_v53 = vsub.f32 %v3812_v52, %v3826_v30  ;;  %v2110_v39 = vsub.f32 %v3809_v48, %v3826_v30  ;;  %v2113_v3 = vmul.f32 %v3819_v62, %v2105_v46  ;;  %v2117_v4 = vmul.f32 0.0, %v2109_v47 }
 0x17e   :  { %v2114_v60 = vmul.f32 %v3819_v62, %v2106_v53  ;;  %v2118_v61 = vmul.f32 0.0, %v2110_v39  ;;  %v2121_v15 = vmul.f32 %v2113_v3, %v2113_v3 }
 0x180   :  { %v2122_v11 = vmul.f32 %v2114_v60, %v2114_v60  ;;  %v2126_v41 = vmul.f32 %v2118_v61, %v2118_v61 }
 0x19d   :  { %v1861_v16 = vpop.f32.mrf.mxu0 }
 0x19e   :  { %v1904_v17 = vpop.f32.mrf.mxu1 }
 0x19f   :  { %v1863_v22 = vpop.f32.mrf.mxu0  ;;  %v1905_v33 = vadd.f32 %v1904_v17, %v1861_v16  ;;  %v2125_v16 = vmul.f32 %v2117_v4, %v2117_v4 }
 0x1a0   :  { %v1906_v23 = vpop.f32.mrf.mxu1 }
 0x1a1   :  { %v1865_v27 = vpop.f32.mrf.mxu0  ;;  %v1907_v8 = vadd.f32 %v1906_v23, %v1863_v22  ;;  %v2136_v22 = vadd.f32 %v2126_v41, %v2122_v11  ;;  %v2129_v26 = vadd.f32 %v2125_v16, %v2121_v15 }
 0x1a2   :  { %v1908_v28 = vpop.f32.mrf.mxu1 }
 0x1a3   :  { %v1867_v31 = vpop.f32.mrf.mxu0  ;;  %v1909_v40 = vadd.f32 %v1908_v28, %v1865_v27  ;;  %v2137_v29 = vrot.slane %v2136_v22, 4 }
 0x1a4   :  { %v1910_v32 = vpop.f32.mrf.mxu1 }
 0x1a5   :  { %v1911_v51 = vadd.f32 %v1910_v32, %v1867_v31 }
 0x1dd   :  { %v1947_v37 = vpop.f32.mrf.mxu0 }
 0x1de   :  { %v1990_v21 = vpop.f32.mrf.mxu1  ;;  %v1948_v9 = vadd.f32 %v1947_v37, %v1905_v33  ;;  %v2130_v33 = vrot.slane %v2129_v26, 4 }
 0x1df   :  { %v1949_v55 = vpop.f32.mrf.mxu0 }
 0x1e0   :  { %v1992_v43 = vpop.f32.mrf.mxu1  ;;  %v1991_v42 = vadd.f32 %v1990_v21, %v1948_v9  ;;  %v1950_v45 = vadd.f32 %v1949_v55, %v1907_v8  ;;  %v2138_v8 = vadd.f32 %v2137_v29, %v2136_v22  ;;  %v2131_v39 = vadd.f32 %v2130_v33, %v2129_v26 }
 0x1e1   :  { %v1951_v49 = vpop.f32.mrf.mxu0 }
 0x1e2   :  { %v1994_v50 = vpop.f32.mrf.mxu1  ;;  %v1993_v56 = vadd.f32 %v1992_v43, %v1950_v45  ;;  %v1952_v59 = vadd.f32 %v1951_v49, %v1909_v40  ;;  %v3849_v0 = vadd.f32 %v2039_v44, %v1991_v42  ;;  %v2139_v40 = vrot.slane %v2138_v8, 2 }
 0x1e3   :  { %v1953_v63 = vpop.f32.mrf.mxu0  ;;  %v2132_v45 = vrot.slane %v2131_v39, 2 }
 0x1e4   :  { %v1995_v1 = vadd.f32 %v1994_v50, %v1952_v59  ;;  %v1954_v2 = vadd.f32 %v1953_v63, %v1911_v51  ;;  %v1996_v5 = vpop.f32.mrf.mxu1  ;;  %v3852_v6 = vadd.f32 %v2043_v58, %v1993_v56  ;;  %v2067_v12 = vmul.f32 %v3819_v62, %v3849_v0 }
 0x1e5   :  { %v2140_v50 = vadd.f32 %v2139_v40, %v2138_v8  ;;  %v2133_v60 = vadd.f32 %v2132_v45, %v2131_v39 }
 0x1e6   :  { %v3854_v7 = vadd.f32 %v2039_v44, %v1995_v1  ;;  %v1997_v10 = vadd.f32 %v1996_v5, %v1954_v2  ;;  %v2068_v17 = vmul.f32 %v3819_v62, %v3852_v6 }
 0x1e7   :  { %v2141_v3 = vrot.slane %v2140_v50, 1  ;;  %v2134_v11 = vrot.slane %v2133_v60, 1 }
 0x1e8   :  { %v2071_v13 = vmul.f32 0.0, %v3854_v7  ;;  %v3859_v14 = vadd.f32 %v2043_v58, %v1997_v10 }
 0x1ea   :  { %v2087_v18 = vadd.f32 %v2071_v13, %v2067_v12  ;;  %v2072_v19 = vmul.f32 0.0, %v3859_v14  ;;  %v2142_v13 = vadd.f32 %v2141_v3, %v2140_v50 }
 0x1ec   :  { %v2088_v23 = vrot.slane %v2087_v18, 4  ;;  %v2094_v25 = vadd.f32 %v2072_v19, %v2068_v17  ;;  %v2135_v17 = vadd.f32 %v2134_v11, %v2133_v60  ;;  %v2158_v22 = vmul.f32 0.5, %v2142_v13 }
 0x1ee   :  { %v2089_v27 = vadd.f32 %v2088_v23, %v2087_v18  ;;  %v2095_v28 = vrot.slane %v2094_v25, 4  ;;  %v2157_v26 = vmul.f32 0.5, %v2135_v17 }
 0x1f0   :  { %v2090_v31 = vrot.slane %v2089_v27, 2  ;;  %v2096_v32 = vadd.f32 %v2095_v28, %v2094_v25  ;;  %v2163_v28 = vadd.f32 1e-05, %v2158_v22 }
 0x1f2   :  { %v2091_v37 = vadd.f32 %v2090_v31, %v2089_v27  ;;  %v2097_v21 = vrot.slane %v2096_v32, 2  ;;  %3610 = vrsqrt.f32 %v2163_v28 }
 0x1f4   :  { %v2092_v9 = vrot.slane %v2091_v37, 1  ;;  %v2098_v53 = vadd.f32 %v2097_v21, %v2096_v32  ;;  %v2162_v32 = vadd.f32 1e-05, %v2157_v26 }
 0x1f6   :  { %v2093_v55 = vadd.f32 %v2092_v9, %v2091_v37  ;;  %v2099_v43 = vrot.slane %v2098_v53, 1  ;;  %3612 = vrsqrt.f32 %v2162_v32 }
 0x1f8   :  { %v3864_v42 = vmul.f32 0.5, %v2093_v55  ;;  %v2100_v44 = vadd.f32 %v2099_v43, %v2098_v53  ;;  %v3669_v53 = vmov 1966171168  }
 0x1f9   :  { %v2177_v39 = vunpack.c.l.s4 %v3669_v53 }
 0x1fa   :  { %v2107_v46 = vsub.f32 %v3849_v0, %v3864_v42  ;;  %v2111_v47 = vsub.f32 %v3854_v7, %v3864_v42  ;;  %v3870_v49 = vmul.f32 0.5, %v2100_v44 }
 0x1fb   :  { %v2178_v55 = vunpack.c.0.s8 %v2177_v39 }
 0x1fc   :  { %v2115_v51 = vmul.f32 %v3819_v62, %v2107_v46  ;;  %v2119_v56 = vmul.f32 0.0, %v2111_v47  ;;  %v2108_v58 = vsub.f32 %v3852_v6, %v3870_v49  ;;  %v2112_v59 = vsub.f32 %v3859_v14, %v3870_v49 }
 0x1fd   :  { %v2181_v46 = vsub.s32 %v2178_v55, %v3789_v24 }
 0x1fe   :  { %v2123_v61 = vmul.f32 %v2115_v51, %v2115_v51  ;;  %v2127_v63 = vmul.f32 %v2119_v56, %v2119_v56  ;;  %v2116_v1 = vmul.f32 %v3819_v62, %v2108_v58  ;;  %v2120_v2 = vmul.f32 0.0, %v2112_v59  ;;  %v2161_v59 = vld [vmem:[%s3920_s3] sm:$0xf] }
 0x1ff   :  { %v3611_v43 = vpop.eup %3610 }
 0x200   :  { %v2143_v4 = vadd.f32 %v2127_v63, %v2123_v61  ;;  %v2124_v5 = vmul.f32 %v2116_v1, %v2116_v1  ;;  %v2128_v10 = vmul.f32 %v2120_v2, %v2120_v2 }
 0x202   :  { %v2144_v41 = vrot.slane %v2143_v4, 4  ;;  %v2150_v12 = vadd.f32 %v2128_v10, %v2124_v5 }
 0x203   :  { %v3613_v40 = vpop.eup %3612 }
 0x204   :  { %v2145_v15 = vadd.f32 %v2144_v41, %v2143_v4  ;;  %v2151_v16 = vrot.slane %v2150_v12, 4  ;;  %v2174_v45 = vcombine.low %v3613_v40, %v3611_v43 }
 0x206   :  { %v2146_v18 = vrot.slane %v2145_v15, 2  ;;  %v2152_v19 = vadd.f32 %v2151_v16, %v2150_v12  ;;  %v2182_v51 = vrot.slane %v2174_v45, %v2181_v46  ;;  %v2200_v16 = vld [vmem:[%s3921_s4] sm:$0xf] }
 0x208   :  { %v2147_v23 = vadd.f32 %v2146_v18, %v2145_v15  ;;  %v2153_v25 = vrot.slane %v2152_v19, 2 }
 0x20a   :  { %v2148_v27 = vrot.slane %v2147_v23, 1  ;;  %v2154_v62 = vadd.f32 %v2153_v25, %v2152_v19 }
 0x20c   :  { %v2149_v29 = vadd.f32 %v2148_v27, %v2147_v23  ;;  %v2155_v31 = vrot.slane %v2154_v62, 1 }
 0x20e   :  { %v2159_v33 = vmul.f32 0.5, %v2149_v29  ;;  %v2156_v37 = vadd.f32 %v2155_v31, %v2154_v62 }
 0x210   :  { %v2164_v21 = vadd.f32 1e-05, %v2159_v33  ;;  %v2160_v8 = vmul.f32 0.5, %v2156_v37 }
 0x212   :  { %v2165_v9 = vadd.f32 1e-05, %v2160_v8  ;;  %3614 = vrsqrt.f32 %v2164_v21 }
 0x214   :  { %3616 = vrsqrt.f32 %v2165_v9 }
 0x21f   :  { %v3615_v44 = vpop.eup %3614 }
 0x221   :  { %v3617_v47 = vpop.eup %3616 }
 0x222   :  { %v2175_v50 = vcombine.low %v3615_v44, %v3617_v47 }
 0x224   :  { %v2189_v56 = vrot.slane %v2175_v50, %v2181_v46 }
 0x226   :  { %v2190_v58 = vcombine.low %v2182_v51, %v2189_v56 }
 0x228   :  { %v2197_v60 = vrot.slane %v2190_v58, %v2181_v46 }
 0x22a   :  { %v2199_v61 = vmul.f32 %v2197_v60, %v2161_v59 }
 0x22c   :  { %v2213_v63 = vrot.slane %v2199_v61, %v3829_v34  ;;  %v2217_v1 = vrot.slane %v2199_v61, %v3834_v38  ;;  %v2205_v2 = vrot.slane %v2199_v61, %v3798_v20  ;;  %v2209_v3 = vrot.slane %v2199_v61, %v3795_v35 }
 0x22e   :  { %v2224_v24 = vmul.f32 %v2213_v63, %v3864_v42  ;;  %v2225_v4 = vmul.f32 %v2217_v1, %v3870_v49  ;;  %v2222_v5 = vmul.f32 %v2205_v2, %v3831_v36  ;;  %v2223_v10 = vmul.f32 %v2209_v3, %v3826_v30 }
 0x22f   :  { %v2263_v19 = vmul.f32 %v2217_v1, %v3859_v14  ;;  %v2257_v42 = vmul.f32 %v2209_v3, %v3812_v52  ;;  %v2261_v49 = vmul.f32 %v2209_v3, %v3809_v48  ;;  %v2259_v36 = vmul.f32 %v2217_v1, %v3852_v6 }
 0x230   :  { %v2231_v11 = vcombine.low %v2224_v24, %v2225_v4  ;;  %v2230_v41 = vcombine.low %v2222_v5, %v2223_v10  ;;  %v2256_v26 = vmul.f32 %v2205_v2, %v3816_v57  ;;  %v2260_v27 = vmul.f32 %v2205_v2, %v3814_v54 }
 0x231   :  { %v2258_v14 = vmul.f32 %v2213_v63, %v3849_v0  ;;  %v2262_v52 = vmul.f32 %v2213_v63, %v3854_v7 }
 0x232   :  { %v2245_v12 = vrot.slane %v2231_v11, %v2181_v46  ;;  %v2238_v13 = vrot.slane %v2230_v41, %v2181_v46 }
 0x234   :  { %v2246_v15 = vcombine.low %v2238_v13, %v2245_v12 }
 0x236   :  { %v2253_v17 = vrot.slane %v2246_v15, %v2181_v46 }
 0x238   :  { %v2255_v18 = vsub.f32 %v2200_v16, %v2253_v17 }
 0x23a   :  { %v2272_v30 = vrot.slane %v2255_v18, %v3795_v35  ;;  %v2280_v22 = vrot.slane %v2255_v18, %v3834_v38  ;;  %v2268_v23 = vrot.slane %v2255_v18, %v3798_v20  ;;  %v2276_v25 = vrot.slane %v2255_v18, %v3829_v34 }
 0x23c   :  { %v2286_v62 = vadd.f32 %v2272_v30, %v2257_v42  ;;  %v2290_v48 = vadd.f32 %v2272_v30, %v2261_v49  ;;  %v2288_v28 = vadd.f32 %v2280_v22, %v2259_v36  ;;  %v2292_v6 = vadd.f32 %v2280_v22, %v2263_v19 }
 0x23d   :  { %v2285_v29 = vadd.f32 %v2268_v23, %v2256_v26  ;;  %v2289_v35 = vadd.f32 %v2268_v23, %v2260_v27  ;;  %v2287_v31 = vadd.f32 %v2276_v25, %v2258_v14  ;;  %v2291_v38 = vadd.f32 %v2276_v25, %v2262_v52 }
 0x23e   :  { %v2294_v32 = vmul.f32 0.2, %v2286_v62  ;;  %v2298_v20 = vmul.f32 0.2, %v2290_v48  ;;  %v2296_v33 = vmul.f32 0.2, %v2288_v28 }
 0x23f   :  { %v2300_v34 = vmul.f32 0.2, %v2292_v6  ;;  %v2293_v37 = vmul.f32 0.2, %v2285_v29  ;;  %v2297_v57 = vmul.f32 0.2, %v2289_v35 }
 0x240   :  { %v2302_v21 = vmax.f32 %v2286_v62, %v2294_v32  ;;  %v2306_v54 = vmax.f32 %v2290_v48, %v2298_v20  ;;  %v2304_v8 = vmax.f32 %v2288_v28, %v2296_v33  ;;  %v2295_v0 = vmul.f32 0.2, %v2287_v31 }
 0x241   :  { %v2308_v9 = vmax.f32 %v2292_v6, %v2300_v34  ;;  %v2301_v7 = vmax.f32 %v2285_v29, %v2293_v37  ;;  %v2305_v53 = vmax.f32 %v2289_v35, %v2297_v57  ;;  %v2299_v39 = vmul.f32 0.2, %v2291_v38 }
 0x242   :  { %v2310_v55 = vpack.c.bf16 %v2306_v54, %v2302_v21  ;;  %v2303_v43 = vmax.f32 %v2287_v31, %v2295_v0 }
 0x243   :  { %v2312_v40 = vpack.c.bf16 %v2308_v9, %v2304_v8  ;;  %v2309_v44 = vpack.c.bf16 %v2305_v53, %v2301_v7  ;;  %v2307_v45 = vmax.f32 %v2291_v38, %v2299_v39 }
 0x244   :  { %2729 = vmatprep.mubr.bf16.mxu0 %v2310_v55 }
 0x245   :  { %2772 = vmatprep.mubr.bf16.mxu1 %v2312_v40  ;;  %2730 = vmatmul.mubr.bf16.vlgmr.msra.gmra.mxu0 %v2309_v44  ;;  %v2311_v46 = vpack.c.bf16 %v2307_v45, %v2303_v43 }
 0x247   :  { %2773 = vmatmul.mubr.bf16.vlgmr.msra.gmra.mxu1 %v2311_v46 }
 0x305   :  { %v2731_v47 = vpop.f32.mrf.mxu0 }
 0x307   :  { %v2774_v50 = vpop.f32.mrf.mxu1  ;;  %v2733_v51 = vpop.f32.mrf.mxu0 }
 0x308   :  { %v2775_v56 = vadd.f32 %v2774_v50, %v2731_v47 }
 0x309   :  { %v2776_v58 = vpop.f32.mrf.mxu1  ;;  %v2735_v59 = vpop.f32.mrf.mxu0 }
 0x30a   :  { %2783 = vst [vmem:[%s3923_s6] sm:$0xff] %v2775_v56  ;;  %v2777_v60 = vadd.f32 %v2776_v58, %v2733_v51 }
 0x30b   :  { %v2778_v61 = vpop.f32.mrf.mxu1  ;;  %v2737_v63 = vpop.f32.mrf.mxu0 }
 0x30c   :  { %2784 = vst [vmem:[%s3923_s6 + $0x8] sm:$0xff] %v2777_v60  ;;  %v2779_v1 = vadd.f32 %v2778_v61, %v2735_v59 }
 0x30d   :  { %v2780_v2 = vpop.f32.mrf.mxu1 }
 0x30e   :  { %2785 = vst [vmem:[%s3923_s6 + $0x10] sm:$0xff] %v2779_v1  ;;  %v2781_v3 = vadd.f32 %v2780_v2, %v2737_v63 }
 0x310   :  { %2786 = vst [vmem:[%s3923_s6 + $0x18] sm:$0xff] %v2781_v3 }
 0x311   :  { %2791 = vsyncpa [#allocation4], 1 }
 0x312   :  { %2792 = vsyncpa [#allocation6], 1 }

</bundles_post_ra>
